<compile_context>
chip_gen: v6e
topology: v6e:2x2x1
jax: 0.10.0
libtpu: 0.0.40
codegen_flags: <defaults>
</compile_context>

<pallas_src>
import functools

import jax
import jax.numpy as jnp
from jax import lax
from jax.experimental import pallas as pl
from jax.experimental.pallas import tpu as pltpu


def _round_up(x, m):
    return ((x + m - 1) // m) * m


def lstm_kernel(x_ref, wih_ref, whh_ref, b_ref,
                out_ref, hn_ref, cn_ref,
                h_scr, c_scr, o_stage,
                *, seq_len, packed, guard_tail):
    """One (batch-block, time-chunk) grid step of a single-layer LSTM.

    Grid: (batch block b: 'parallel', time chunk tc: 'arbitrary').

    x_ref    : (Tc, Bb, 1)  f32  time-major input chunk
    wih_ref  : (1, 4G)      f32  W_ih row 0 (gate layout i|f|g|o, G lanes/gate)
    whh_ref  : (G, 4G)      f32  W_hh transposed so gates = h @ whh
    b_ref    : (1, 4G)      f32  b_ih + b_hh
    out_ref  : (Bb, Tc, G)  f32  batch-first hidden states for this chunk
    hn_ref   : (Bb, G)      f32  final hidden state (block resident across tc)
    cn_ref   : (Bb, G)      f32  final cell state   (block resident across tc)
    h_scr    : (Bb, G)      f32  persistent recurrent state across time chunks
    c_scr    : (Bb, G)      f32  persistent recurrent state across time chunks
    o_stage  : (Bb, 8, G)   f32  8-step output staging buffer
    """
    Tc = x_ref.shape[0]
    G = wih_ref.shape[-1] // 4
    n_sub = Tc // 8
    tc = pl.program_id(1)

    # New batch block -> reset the recurrent state held in persistent scratch.
    @pl.when(tc == 0)
    def _():
        h_scr[...] = jnp.zeros_like(h_scr)
        c_scr[...] = jnp.zeros_like(c_scr)

    wih = wih_ref[...]        # (1, 4G): tiny, fine to keep live
    bias = b_ref[...]         # (1, 4G)
    t_base = tc * Tc

    def cell(h, c, t):
        # Per-step input projection (input_size == 1) + bias: a few VPU vregs,
        # hidden under the MXU/EUP chain -- no full-T xproj scratch.
        # W_hh is re-read from VMEM every step (rides spare vld slots) rather
        # than hoisted into a loop-carried value (would consume the vreg file
        # across the unrolled steps and force spills).
        gates = (x_ref[t] * wih + bias +
                 jnp.dot(h, whh_ref[...], preferred_element_type=jnp.float32))
        if packed:
            # All four gates fit in 4H <= 128 contiguous lanes: one sigmoid
            # pass + one tanh pass over the packed vector (EUP); gate selects
            # are lane slices handled by the (otherwise idle) XLU.
            sg = jax.nn.sigmoid(gates)
            th = jnp.tanh(gates)
            i_g, f_g = sg[:, 0:G], sg[:, G:2 * G]
            g_g, o_g = th[:, 2 * G:3 * G], sg[:, 3 * G:4 * G]
        else:
            # Per-gate padded to a 128-lane multiple: aligned whole-tile slices.
            i_g = jax.nn.sigmoid(gates[:, 0:G])
            f_g = jax.nn.sigmoid(gates[:, G:2 * G])
            g_g = jnp.tanh(gates[:, 2 * G:3 * G])
            o_g = jax.nn.sigmoid(gates[:, 3 * G:4 * G])
        c_new = f_g * c + i_g * g_g
        h_new = o_g * jnp.tanh(c_new)
        return h_new, c_new

    def sub_block(blk, carry):
        h, c = carry
        for j in range(8):                      # modest unroll: 8 steps
            t = blk * 8 + j
            h_new, c_new = cell(h, c, t)
            if guard_tail:
                # Freeze the state on padded tail steps so hn/cn == state at T-1.
                valid = (t_base + t) < seq_len
                h_new = jnp.where(valid, h_new, h)
                c_new = jnp.where(valid, c_new, c)
            o_stage[:, j:j + 1, :] = h_new[:, None, :]
            h, c = h_new, c_new
        # Flush 8 staged timesteps into the batch-first output block as aligned
        # sublane tiles (avoids a post-kernel HBM transpose of the output).
        t0 = pl.multiple_of(blk * 8, 8)
        out_ref[:, pl.ds(t0, 8), :] = o_stage[...]
        return (h, c)

    h_f, c_f = lax.fori_loop(0, n_sub, sub_block, (h_scr[...], c_scr[...]))
    h_scr[...] = h_f
    c_scr[...] = c_f
    hn_ref[...] = h_f
    cn_ref[...] = c_f


@functools.partial(jax.jit,
                   static_argnames=("hidden_size", "batch_block", "t_chunk"))
def encoder_forward(inp, w_ih, w_hh, b_ih, b_hh, *, hidden_size,
                    batch_block=None, t_chunk=None):
    """Mirrors Encoder.forward: returns (output, hidden, last_cell)."""
    B, T = inp.shape
    H = hidden_size

    # Gate lane width: pack the 4 gates into 4H contiguous lanes when they fit
    # in one 128-lane tile (small H); otherwise pad each gate to a 128 multiple
    # so gate slices stay lane-aligned.
    packed = (4 * H) <= 128
    G = H if packed else _round_up(H, 128)

    # Batch block: as large as practical (up to 128 rows) so the recurrent
    # matmul amortizes the W_hh push through the MXU.  Multiple of 8 (sublane).
    if batch_block is None:
        batch_block = min(_round_up(B, 8), 128)
    Bb = _round_up(batch_block, 8)
    Bp = _round_up(B, Bb)
    n_bblocks = Bp // Bb

    # Time chunk: VMEM use stays constant in T (h/c persist in scratch);
    # x / output stream through HBM<->VMEM in Tc-step chunks (Tc multiple of 8).
    if t_chunk is None:
        t_chunk = T if T <= 64 else 64
    Tc = _round_up(min(t_chunk, T), 8)
    Tp = _round_up(T, Tc)
    n_tchunks = Tp // Tc
    guard_tail = Tp > T

    # --- input: pad batch/time, go time-major, unsqueeze(-1) (input_size=1) ---
    x = jnp.pad(inp.astype(jnp.float32), ((0, Bp - B), (0, Tp - T)))  # (Bp, Tp)
    x_tbi = jnp.transpose(x)[:, :, None]                              # (Tp, Bp, 1)

    f32 = lambda a: a.astype(jnp.float32)
    # W_ih: (4H, 1) -> (1, 4G) laid out [i|f|g|o], each gate G lanes wide.
    wih_p = jnp.pad(f32(w_ih)[:, 0].reshape(4, H),
                    ((0, 0), (0, G - H))).reshape(1, 4 * G)
    # W_hh: (4H, H) -> (G, 4G), transposed so gates = h @ whh.
    whh_g = jnp.transpose(f32(w_hh).reshape(4, H, H), (2, 0, 1))       # (H, 4, H)
    whh_p = jnp.pad(whh_g, ((0, G - H), (0, 0), (0, G - H))).reshape(G, 4 * G)
    # bias: b_ih + b_hh, per-gate padded.
    b_p = jnp.pad(f32(b_ih + b_hh).reshape(4, H),
                  ((0, 0), (0, G - H))).reshape(1, 4 * G)

    kernel = functools.partial(lstm_kernel, seq_len=T, packed=packed,
                               guard_tail=guard_tail)

    out_bf, h_n, c_n = pl.pallas_call(
        kernel,
        grid=(n_bblocks, n_tchunks),
        in_specs=[
            pl.BlockSpec((Tc, Bb, 1), lambda b, t: (t, b, 0)),   # x chunk
            pl.BlockSpec((1, 4 * G), lambda b, t: (0, 0)),       # W_ih
            pl.BlockSpec((G, 4 * G), lambda b, t: (0, 0)),       # W_hh
            pl.BlockSpec((1, 4 * G), lambda b, t: (0, 0)),       # bias
        ],
        out_specs=(
            pl.BlockSpec((Bb, Tc, G), lambda b, t: (b, t, 0)),   # batch-first out
            pl.BlockSpec((Bb, G), lambda b, t: (b, 0)),          # h_n
            pl.BlockSpec((Bb, G), lambda b, t: (b, 0)),          # c_n
        ),
        out_shape=(
            jax.ShapeDtypeStruct((Bp, Tp, G), jnp.float32),
            jax.ShapeDtypeStruct((Bp, G), jnp.float32),
            jax.ShapeDtypeStruct((Bp, G), jnp.float32),
        ),
        scratch_shapes=[
            pltpu.VMEM((Bb, G), jnp.float32),      # persistent h state
            pltpu.VMEM((Bb, G), jnp.float32),      # persistent c state
            pltpu.VMEM((Bb, 8, G), jnp.float32),   # 8-step output staging
        ],
        compiler_params=pltpu.CompilerParams(
            dimension_semantics=("parallel", "arbitrary")),
    )(x_tbi, wih_p, whh_p, b_p)

    # Output is already batch-first; just strip batch/time/lane padding.
    output = out_bf[:B, :T, :H]        # (B, T, H)
    hidden = h_n[:B, :H][None]         # (1, B, H)
    last_cell = c_n[:B, :H][None]      # (1, B, H)
    return output, hidden, last_cell


def lstm_reference(inp, w_ih, w_hh, b_ih, b_hh, hidden_size):
    """Pure-JAX reference (PyTorch LSTM equations) for correctness check."""
    B, T = inp.shape
    H = hidden_size
    x = inp[..., None].astype(jnp.float32)
    b = (b_ih + b_hh)[None, :]

    def step(carry, x_t):
        h, c = carry
        gates = x_t @ w_ih.T + h @ w_hh.T + b
        i = jax.nn.sigmoid(gates[:, 0 * H:1 * H])
        f = jax.nn.sigmoid(gates[:, 1 * H:2 * H])
        g = jnp.tanh(gates[:, 2 * H:3 * H])
        o = jax.nn.sigmoid(gates[:, 3 * H:4 * H])
        c = f * c + i * g
        h = o * jnp.tanh(c)
        return (h, c), h

    (h_f, c_f), ys = lax.scan(step, (jnp.zeros((B, H)), jnp.zeros((B, H))),
                              jnp.transpose(x, (1, 0, 2)))
    return jnp.transpose(ys, (1, 0, 2)), h_f[None], c_f[None]


if __name__ == "__main__":
    def run_case(case_idx, B, T, H, **kw):
        key = jax.random.fold_in(jax.random.PRNGKey(0), case_idx)
        k_x, k_wih, k_whh, k_bih, k_bhh = jax.random.split(key, 5)

        # Deterministic parameter init, PyTorch-style U(-1/sqrt(H), 1/sqrt(H)).
        bound = 1.0 / (H ** 0.5)
        w_ih = jax.random.uniform(k_wih, (4 * H, 1), jnp.float32, -bound, bound)
        w_hh = jax.random.uniform(k_whh, (4 * H, H), jnp.float32, -bound, bound)
        b_ih = jax.random.uniform(k_bih, (4 * H,), jnp.float32, -bound, bound)
        b_hh = jax.random.uniform(k_bhh, (4 * H,), jnp.float32, -bound, bound)
        inp = jax.random.normal(k_x, (B, T), jnp.float32)

        output, hidden, last_cell = encoder_forward(
            inp, w_ih, w_hh, b_ih, b_hh, hidden_size=H, **kw)
        jax.block_until_ready((output, hidden, last_cell))

        ref_out, ref_h, ref_c = lstm_reference(inp, w_ih, w_hh, b_ih, b_hh, H)
        assert output.shape == (B, T, H)
        assert hidden.shape == (1, B, H)
        assert last_cell.shape == (1, B, H)
        assert jnp.allclose(output, ref_out, atol=1e-4, rtol=1e-4)
        assert jnp.allclose(hidden, ref_h, atol=1e-4, rtol=1e-4)
        assert jnp.allclose(last_cell, ref_c, atol=1e-4, rtol=1e-4)

    # Primary small case implied by Encoder.forward (inp.unsqueeze(-1) -> input_size=1).
    run_case(0, B=4, T=8, H=32)
    # Exercise multi batch-block / multi time-chunk / padded-tail-guard paths.
    run_case(1, B=10, T=21, H=32, batch_block=8, t_chunk=8)
    # Exercise the per-gate padded path (4H > 128).
    run_case(2, B=4, T=8, H=160)

    print("KERNEL_OK")
</pallas_src>

<mosaic_0001>
module attributes {stable_mosaic.version = 11 : i64} {
  func.func @lstm_kernel(%arg0: i32, %arg1: i32, %arg2: memref<8x8x1xf32, #tpu.memory_space<vmem>>, %arg3: memref<1x128xf32, #tpu.memory_space<vmem>>, %arg4: memref<32x128xf32, #tpu.memory_space<vmem>>, %arg5: memref<1x128xf32, #tpu.memory_space<vmem>>, %arg6: memref<8x8x32xf32, #tpu.memory_space<vmem>>, %arg7: memref<8x32xf32, #tpu.memory_space<vmem>>, %arg8: memref<8x32xf32, #tpu.memory_space<vmem>>, %arg9: memref<8x32xf32, #tpu.memory_space<vmem>>, %arg10: memref<8x32xf32, #tpu.memory_space<vmem>>, %arg11: memref<8x8x32xf32, #tpu.memory_space<vmem>>) attributes {dimension_semantics = [#tpu.dimension_semantics<parallel>, #tpu.dimension_semantics<arbitrary>], iteration_bounds = array<i64: 1, 1>, scalar_prefetch = 0 : i64, scratch_operands = 3 : i64, tpu.core_type = #tpu.core_type<tc>, window_params = [{transform_indices = @transform_0, window_bounds = array<i64: 8, 8, 1>}, {pipeline_mode = #tpu.pipeline_mode<synchronous>, transform_indices = @transform_1, window_bounds = array<i64: 1, 128>}, {pipeline_mode = #tpu.pipeline_mode<synchronous>, transform_indices = @transform_2, window_bounds = array<i64: 32, 128>}, {pipeline_mode = #tpu.pipeline_mode<synchronous>, transform_indices = @transform_3, window_bounds = array<i64: 1, 128>}, {transform_indices = @transform_4, window_bounds = array<i64: 8, 8, 32>}, {transform_indices = @transform_5, window_bounds = array<i64: 8, 32>}, {transform_indices = @transform_6, window_bounds = array<i64: 8, 32>}]} {
    %c0_i32 = arith.constant 0 : i32
    %0 = arith.cmpi eq, %arg1, %c0_i32 : i32
    %1 = arith.extui %0 : i1 to i32
    %c0_i32_0 = arith.constant 0 : i32
    %2 = arith.cmpi ne, %1, %c0_i32_0 : i32
    scf.if %2 {
      %cst_96 = arith.constant 0.000000e+00 : f32
      %256 = vector.broadcast %cst_96 : f32 to vector<8x32xf32>
      %c0_97 = arith.constant 0 : index
      %c0_98 = arith.constant 0 : index
      %257 = vector.load %arg9[%c0_97, %c0_98] : memref<8x32xf32, #tpu.memory_space<vmem>>, vector<8x32xf32>
      tpu.vector_store %arg9[%c0_97, %c0_98], %256 {strides = array<i32>} : memref<8x32xf32, #tpu.memory_space<vmem>>, vector<8x32xf32>,
      %cst_99 = arith.constant 0.000000e+00 : f32
      %258 = vector.broadcast %cst_99 : f32 to vector<8x32xf32>
      %c0_100 = arith.constant 0 : index
      %c0_101 = arith.constant 0 : index
      %259 = vector.load %arg10[%c0_100, %c0_101] : memref<8x32xf32, #tpu.memory_space<vmem>>, vector<8x32xf32>
      tpu.vector_store %arg10[%c0_100, %c0_101], %258 {strides = array<i32>} : memref<8x32xf32, #tpu.memory_space<vmem>>, vector<8x32xf32>,
    } else {
    }
    %c0 = arith.constant 0 : index
    %c0_1 = arith.constant 0 : index
    %3 = vector.load %arg3[%c0, %c0_1] : memref<1x128xf32, #tpu.memory_space<vmem>>, vector<1x128xf32>
    %c0_2 = arith.constant 0 : index
    %c0_3 = arith.constant 0 : index
    %4 = vector.load %arg5[%c0_2, %c0_3] : memref<1x128xf32, #tpu.memory_space<vmem>>, vector<1x128xf32>
    %c0_4 = arith.constant 0 : index
    %c0_5 = arith.constant 0 : index
    %5 = vector.load %arg9[%c0_4, %c0_5] : memref<8x32xf32, #tpu.memory_space<vmem>>, vector<8x32xf32>
    %c0_6 = arith.constant 0 : index
    %c0_7 = arith.constant 0 : index
    %6 = vector.load %arg10[%c0_6, %c0_7] : memref<8x32xf32, #tpu.memory_space<vmem>>, vector<8x32xf32>
    %c0_i32_8 = arith.constant 0 : i32
    %c8_i32 = arith.constant 8 : i32
    %7 = arith.muli %c0_i32_8, %c8_i32 : i32
    %c0_i32_9 = arith.constant 0 : i32
    %8 = arith.addi %7, %c0_i32_9 : i32
    %9 = arith.index_cast %8 : i32 to index
    %c0_10 = arith.constant 0 : index
    %c0_11 = arith.constant 0 : index
    %10 = vector.load %arg2[%9, %c0_10, %c0_11] : memref<8x8x1xf32, #tpu.memory_space<vmem>>, vector<1x8x1xf32>
    %11 = vector.shape_cast %10 : vector<1x8x1xf32> to vector<8x1xf32>
    %12 = vector.broadcast %11 : vector<8x1xf32> to vector<8x128xf32>
    %13 = vector.broadcast %3 : vector<1x128xf32> to vector<8x128xf32>
    %14 = arith.mulf %12, %13 : vector<8x128xf32>
    %15 = vector.broadcast %4 : vector<1x128xf32> to vector<8x128xf32>
    %16 = arith.addf %14, %15 : vector<8x128xf32>
    %c0_12 = arith.constant 0 : index
    %c0_13 = arith.constant 0 : index
    %17 = vector.load %arg4[%c0_12, %c0_13] : memref<32x128xf32, #tpu.memory_space<vmem>>, vector<32x128xf32>
    %cst = arith.constant dense<0.000000e+00> : vector<8x128xf32>
    %18 = tpu.matmul %5, %17, %cst {dimension_numbers = #tpu.dot_dimension_numbers<[1], [0], [0], [1], [0, 0, 1, 1], [], []>} : vector<8x32xf32>, vector<32x128xf32>, vector<8x128xf32> -> vector<8x128xf32>
    %19 = arith.addf %16, %18 : vector<8x128xf32>
    %20 = arith.negf %19 : vector<8x128xf32>
    %21 = math.exp %20 : vector<8x128xf32>
    %cst_14 = arith.constant 1.000000e+00 : f32
    %22 = vector.broadcast %cst_14 : f32 to vector<8x128xf32>
    %23 = arith.addf %22, %21 : vector<8x128xf32>
    %24 = arith.divf %22, %23 : vector<8x128xf32>
    %25 = math.tanh %19 : vector<8x128xf32>
    %26 = vector.extract_strided_slice %24 {offsets = [0, 0], sizes = [8, 32], strides = [1, 1]} : vector<8x128xf32> to vector<8x32xf32>
    %27 = vector.extract_strided_slice %24 {offsets = [0, 32], sizes = [8, 32], strides = [1, 1]} : vector<8x128xf32> to vector<8x32xf32>
    %28 = vector.extract_strided_slice %25 {offsets = [0, 64], sizes = [8, 32], strides = [1, 1]} : vector<8x128xf32> to vector<8x32xf32>
    %29 = vector.extract_strided_slice %24 {offsets = [0, 96], sizes = [8, 32], strides = [1, 1]} : vector<8x128xf32> to vector<8x32xf32>
    %30 = arith.mulf %27, %6 : vector<8x32xf32>
    %31 = arith.mulf %26, %28 : vector<8x32xf32>
    %32 = arith.addf %30, %31 : vector<8x32xf32>
    %33 = math.tanh %32 : vector<8x32xf32>
    %34 = arith.mulf %29, %33 : vector<8x32xf32>
    %35 = vector.shape_cast %34 : vector<8x32xf32> to vector<8x1x32xf32>
    %c0_15 = arith.constant 0 : index
    %c0_16 = arith.constant 0 : index
    %c0_17 = arith.constant 0 : index
    %36 = vector.load %arg11[%c0_15, %c0_16, %c0_17] : memref<8x8x32xf32, #tpu.memory_space<vmem>>, vector<8x1x32xf32>
    tpu.vector_store %arg11[%c0_15, %c0_16, %c0_17], %35 {strides = array<i32>} : memref<8x8x32xf32, #tpu.memory_space<vmem>>, vector<8x1x32xf32>,
    %c8_i32_18 = arith.constant 8 : i32
    %37 = arith.muli %c0_i32_8, %c8_i32_18 : i32
    %c1_i32 = arith.constant 1 : i32
    %38 = arith.addi %37, %c1_i32 : i32
    %39 = arith.index_cast %38 : i32 to index
    %c0_19 = arith.constant 0 : index
    %c0_20 = arith.constant 0 : index
    %40 = vector.load %arg2[%39, %c0_19, %c0_20] : memref<8x8x1xf32, #tpu.memory_space<vmem>>, vector<1x8x1xf32>
    %41 = vector.shape_cast %40 : vector<1x8x1xf32> to vector<8x1xf32>
    %42 = vector.broadcast %41 : vector<8x1xf32> to vector<8x128xf32>
    %43 = vector.broadcast %3 : vector<1x128xf32> to vector<8x128xf32>
    %44 = arith.mulf %42, %43 : vector<8x128xf32>
    %45 = vector.broadcast %4 : vector<1x128xf32> to vector<8x128xf32>
    %46 = arith.addf %44, %45 : vector<8x128xf32>
    %c0_21 = arith.constant 0 : index
    %c0_22 = arith.constant 0 : index
    %47 = vector.load %arg4[%c0_21, %c0_22] : memref<32x128xf32, #tpu.memory_space<vmem>>, vector<32x128xf32>
    %cst_23 = arith.constant dense<0.000000e+00> : vector<8x128xf32>
    %48 = tpu.matmul %34, %47, %cst_23 {dimension_numbers = #tpu.dot_dimension_numbers<[1], [0], [0], [1], [0, 0, 1, 1], [], []>} : vector<8x32xf32>, vector<32x128xf32>, vector<8x128xf32> -> vector<8x128xf32>
    %49 = arith.addf %46, %48 : vector<8x128xf32>
    %50 = arith.negf %49 : vector<8x128xf32>
    %51 = math.exp %50 : vector<8x128xf32>
    %cst_24 = arith.constant 1.000000e+00 : f32
    %52 = vector.broadcast %cst_24 : f32 to vector<8x128xf32>
    %53 = arith.addf %52, %51 : vector<8x128xf32>
    %54 = arith.divf %52, %53 : vector<8x128xf32>
    %55 = math.tanh %49 : vector<8x128xf32>
    %56 = vector.extract_strided_slice %54 {offsets = [0, 0], sizes = [8, 32], strides = [1, 1]} : vector<8x128xf32> to vector<8x32xf32>
    %57 = vector.extract_strided_slice %54 {offsets = [0, 32], sizes = [8, 32], strides = [1, 1]} : vector<8x128xf32> to vector<8x32xf32>
    %58 = vector.extract_strided_slice %55 {offsets = [0, 64], sizes = [8, 32], strides = [1, 1]} : vector<8x128xf32> to vector<8x32xf32>
    %59 = vector.extract_strided_slice %54 {offsets = [0, 96], sizes = [8, 32], strides = [1, 1]} : vector<8x128xf32> to vector<8x32xf32>
    %60 = arith.mulf %57, %32 : vector<8x32xf32>
    %61 = arith.mulf %56, %58 : vector<8x32xf32>
    %62 = arith.addf %60, %61 : vector<8x32xf32>
    %63 = math.tanh %62 : vector<8x32xf32>
    %64 = arith.mulf %59, %63 : vector<8x32xf32>
    %65 = vector.shape_cast %64 : vector<8x32xf32> to vector<8x1x32xf32>
    %c0_25 = arith.constant 0 : index
    %c1 = arith.constant 1 : index
    %c0_26 = arith.constant 0 : index
    %66 = vector.load %arg11[%c0_25, %c1, %c0_26] : memref<8x8x32xf32, #tpu.memory_space<vmem>>, vector<8x1x32xf32>
    tpu.vector_store %arg11[%c0_25, %c1, %c0_26], %65 {strides = array<i32>} : memref<8x8x32xf32, #tpu.memory_space<vmem>>, vector<8x1x32xf32>,
    %c8_i32_27 = arith.constant 8 : i32
    %67 = arith.muli %c0_i32_8, %c8_i32_27 : i32
    %c2_i32 = arith.constant 2 : i32
    %68 = arith.addi %67, %c2_i32 : i32
    %69 = arith.index_cast %68 : i32 to index
    %c0_28 = arith.constant 0 : index
    %c0_29 = arith.constant 0 : index
    %70 = vector.load %arg2[%69, %c0_28, %c0_29] : memref<8x8x1xf32, #tpu.memory_space<vmem>>, vector<1x8x1xf32>
    %71 = vector.shape_cast %70 : vector<1x8x1xf32> to vector<8x1xf32>
    %72 = vector.broadcast %71 : vector<8x1xf32> to vector<8x128xf32>
    %73 = vector.broadcast %3 : vector<1x128xf32> to vector<8x128xf32>
    %74 = arith.mulf %72, %73 : vector<8x128xf32>
    %75 = vector.broadcast %4 : vector<1x128xf32> to vector<8x128xf32>
    %76 = arith.addf %74, %75 : vector<8x128xf32>
    %c0_30 = arith.constant 0 : index
    %c0_31 = arith.constant 0 : index
    %77 = vector.load %arg4[%c0_30, %c0_31] : memref<32x128xf32, #tpu.memory_space<vmem>>, vector<32x128xf32>
    %cst_32 = arith.constant dense<0.000000e+00> : vector<8x128xf32>
    %78 = tpu.matmul %64, %77, %cst_32 {dimension_numbers = #tpu.dot_dimension_numbers<[1], [0], [0], [1], [0, 0, 1, 1], [], []>} : vector<8x32xf32>, vector<32x128xf32>, vector<8x128xf32> -> vector<8x128xf32>
    %79 = arith.addf %76, %78 : vector<8x128xf32>
    %80 = arith.negf %79 : vector<8x128xf32>
    %81 = math.exp %80 : vector<8x128xf32>
    %cst_33 = arith.constant 1.000000e+00 : f32
    %82 = vector.broadcast %cst_33 : f32 to vector<8x128xf32>
    %83 = arith.addf %82, %81 : vector<8x128xf32>
    %84 = arith.divf %82, %83 : vector<8x128xf32>
    %85 = math.tanh %79 : vector<8x128xf32>
    %86 = vector.extract_strided_slice %84 {offsets = [0, 0], sizes = [8, 32], strides = [1, 1]} : vector<8x128xf32> to vector<8x32xf32>
    %87 = vector.extract_strided_slice %84 {offsets = [0, 32], sizes = [8, 32], strides = [1, 1]} : vector<8x128xf32> to vector<8x32xf32>
    %88 = vector.extract_strided_slice %85 {offsets = [0, 64], sizes = [8, 32], strides = [1, 1]} : vector<8x128xf32> to vector<8x32xf32>
    %89 = vector.extract_strided_slice %84 {offsets = [0, 96], sizes = [8, 32], strides = [1, 1]} : vector<8x128xf32> to vector<8x32xf32>
    %90 = arith.mulf %87, %62 : vector<8x32xf32>
    %91 = arith.mulf %86, %88 : vector<8x32xf32>
    %92 = arith.addf %90, %91 : vector<8x32xf32>
    %93 = math.tanh %92 : vector<8x32xf32>
    %94 = arith.mulf %89, %93 : vector<8x32xf32>
    %95 = vector.shape_cast %94 : vector<8x32xf32> to vector<8x1x32xf32>
    %c0_34 = arith.constant 0 : index
    %c2 = arith.constant 2 : index
    %c0_35 = arith.constant 0 : index
    %96 = vector.load %arg11[%c0_34, %c2, %c0_35] : memref<8x8x32xf32, #tpu.memory_space<vmem>>, vector<8x1x32xf32>
    tpu.vector_store %arg11[%c0_34, %c2, %c0_35], %95 {strides = array<i32>} : memref<8x8x32xf32, #tpu.memory_space<vmem>>, vector<8x1x32xf32>,
    %c8_i32_36 = arith.constant 8 : i32
    %97 = arith.muli %c0_i32_8, %c8_i32_36 : i32
    %c3_i32 = arith.constant 3 : i32
    %98 = arith.addi %97, %c3_i32 : i32
    %99 = arith.index_cast %98 : i32 to index
    %c0_37 = arith.constant 0 : index
    %c0_38 = arith.constant 0 : index
    %100 = vector.load %arg2[%99, %c0_37, %c0_38] : memref<8x8x1xf32, #tpu.memory_space<vmem>>, vector<1x8x1xf32>
    %101 = vector.shape_cast %100 : vector<1x8x1xf32> to vector<8x1xf32>
    %102 = vector.broadcast %101 : vector<8x1xf32> to vector<8x128xf32>
    %103 = vector.broadcast %3 : vector<1x128xf32> to vector<8x128xf32>
    %104 = arith.mulf %102, %103 : vector<8x128xf32>
    %105 = vector.broadcast %4 : vector<1x128xf32> to vector<8x128xf32>
    %106 = arith.addf %104, %105 : vector<8x128xf32>
    %c0_39 = arith.constant 0 : index
    %c0_40 = arith.constant 0 : index
    %107 = vector.load %arg4[%c0_39, %c0_40] : memref<32x128xf32, #tpu.memory_space<vmem>>, vector<32x128xf32>
    %cst_41 = arith.constant dense<0.000000e+00> : vector<8x128xf32>
    %108 = tpu.matmul %94, %107, %cst_41 {dimension_numbers = #tpu.dot_dimension_numbers<[1], [0], [0], [1], [0, 0, 1, 1], [], []>} : vector<8x32xf32>, vector<32x128xf32>, vector<8x128xf32> -> vector<8x128xf32>
    %109 = arith.addf %106, %108 : vector<8x128xf32>
    %110 = arith.negf %109 : vector<8x128xf32>
    %111 = math.exp %110 : vector<8x128xf32>
    %cst_42 = arith.constant 1.000000e+00 : f32
    %112 = vector.broadcast %cst_42 : f32 to vector<8x128xf32>
    %113 = arith.addf %112, %111 : vector<8x128xf32>
    %114 = arith.divf %112, %113 : vector<8x128xf32>
    %115 = math.tanh %109 : vector<8x128xf32>
    %116 = vector.extract_strided_slice %114 {offsets = [0, 0], sizes = [8, 32], strides = [1, 1]} : vector<8x128xf32> to vector<8x32xf32>
    %117 = vector.extract_strided_slice %114 {offsets = [0, 32], sizes = [8, 32], strides = [1, 1]} : vector<8x128xf32> to vector<8x32xf32>
    %118 = vector.extract_strided_slice %115 {offsets = [0, 64], sizes = [8, 32], strides = [1, 1]} : vector<8x128xf32> to vector<8x32xf32>
    %119 = vector.extract_strided_slice %114 {offsets = [0, 96], sizes = [8, 32], strides = [1, 1]} : vector<8x128xf32> to vector<8x32xf32>
    %120 = arith.mulf %117, %92 : vector<8x32xf32>
    %121 = arith.mulf %116, %118 : vector<8x32xf32>
    %122 = arith.addf %120, %121 : vector<8x32xf32>
    %123 = math.tanh %122 : vector<8x32xf32>
    %124 = arith.mulf %119, %123 : vector<8x32xf32>
    %125 = vector.shape_cast %124 : vector<8x32xf32> to vector<8x1x32xf32>
    %c0_43 = arith.constant 0 : index
    %c3 = arith.constant 3 : index
    %c0_44 = arith.constant 0 : index
    %126 = vector.load %arg11[%c0_43, %c3, %c0_44] : memref<8x8x32xf32, #tpu.memory_space<vmem>>, vector<8x1x32xf32>
    tpu.vector_store %arg11[%c0_43, %c3, %c0_44], %125 {strides = array<i32>} : memref<8x8x32xf32, #tpu.memory_space<vmem>>, vector<8x1x32xf32>,
    %c8_i32_45 = arith.constant 8 : i32
    %127 = arith.muli %c0_i32_8, %c8_i32_45 : i32
    %c4_i32 = arith.constant 4 : i32
    %128 = arith.addi %127, %c4_i32 : i32
    %129 = arith.index_cast %128 : i32 to index
    %c0_46 = arith.constant 0 : index
    %c0_47 = arith.constant 0 : index
    %130 = vector.load %arg2[%129, %c0_46, %c0_47] : memref<8x8x1xf32, #tpu.memory_space<vmem>>, vector<1x8x1xf32>
    %131 = vector.shape_cast %130 : vector<1x8x1xf32> to vector<8x1xf32>
    %132 = vector.broadcast %131 : vector<8x1xf32> to vector<8x128xf32>
    %133 = vector.broadcast %3 : vector<1x128xf32> to vector<8x128xf32>
    %134 = arith.mulf %132, %133 : vector<8x128xf32>
    %135 = vector.broadcast %4 : vector<1x128xf32> to vector<8x128xf32>
    %136 = arith.addf %134, %135 : vector<8x128xf32>
    %c0_48 = arith.constant 0 : index
    %c0_49 = arith.constant 0 : index
    %137 = vector.load %arg4[%c0_48, %c0_49] : memref<32x128xf32, #tpu.memory_space<vmem>>, vector<32x128xf32>
    %cst_50 = arith.constant dense<0.000000e+00> : vector<8x128xf32>
    %138 = tpu.matmul %124, %137, %cst_50 {dimension_numbers = #tpu.dot_dimension_numbers<[1], [0], [0], [1], [0, 0, 1, 1], [], []>} : vector<8x32xf32>, vector<32x128xf32>, vector<8x128xf32> -> vector<8x128xf32>
    %139 = arith.addf %136, %138 : vector<8x128xf32>
    %140 = arith.negf %139 : vector<8x128xf32>
    %141 = math.exp %140 : vector<8x128xf32>
    %cst_51 = arith.constant 1.000000e+00 : f32
    %142 = vector.broadcast %cst_51 : f32 to vector<8x128xf32>
    %143 = arith.addf %142, %141 : vector<8x128xf32>
    %144 = arith.divf %142, %143 : vector<8x128xf32>
    %145 = math.tanh %139 : vector<8x128xf32>
    %146 = vector.extract_strided_slice %144 {offsets = [0, 0], sizes = [8, 32], strides = [1, 1]} : vector<8x128xf32> to vector<8x32xf32>
    %147 = vector.extract_strided_slice %144 {offsets = [0, 32], sizes = [8, 32], strides = [1, 1]} : vector<8x128xf32> to vector<8x32xf32>
    %148 = vector.extract_strided_slice %145 {offsets = [0, 64], sizes = [8, 32], strides = [1, 1]} : vector<8x128xf32> to vector<8x32xf32>
    %149 = vector.extract_strided_slice %144 {offsets = [0, 96], sizes = [8, 32], strides = [1, 1]} : vector<8x128xf32> to vector<8x32xf32>
    %150 = arith.mulf %147, %122 : vector<8x32xf32>
    %151 = arith.mulf %146, %148 : vector<8x32xf32>
    %152 = arith.addf %150, %151 : vector<8x32xf32>
    %153 = math.tanh %152 : vector<8x32xf32>
    %154 = arith.mulf %149, %153 : vector<8x32xf32>
    %155 = vector.shape_cast %154 : vector<8x32xf32> to vector<8x1x32xf32>
    %c0_52 = arith.constant 0 : index
    %c4 = arith.constant 4 : index
    %c0_53 = arith.constant 0 : index
    %156 = vector.load %arg11[%c0_52, %c4, %c0_53] : memref<8x8x32xf32, #tpu.memory_space<vmem>>, vector<8x1x32xf32>
    tpu.vector_store %arg11[%c0_52, %c4, %c0_53], %155 {strides = array<i32>} : memref<8x8x32xf32, #tpu.memory_space<vmem>>, vector<8x1x32xf32>,
    %c8_i32_54 = arith.constant 8 : i32
    %157 = arith.muli %c0_i32_8, %c8_i32_54 : i32
    %c5_i32 = arith.constant 5 : i32
    %158 = arith.addi %157, %c5_i32 : i32
    %159 = arith.index_cast %158 : i32 to index
    %c0_55 = arith.constant 0 : index
    %c0_56 = arith.constant 0 : index
    %160 = vector.load %arg2[%159, %c0_55, %c0_56] : memref<8x8x1xf32, #tpu.memory_space<vmem>>, vector<1x8x1xf32>
    %161 = vector.shape_cast %160 : vector<1x8x1xf32> to vector<8x1xf32>
    %162 = vector.broadcast %161 : vector<8x1xf32> to vector<8x128xf32>
    %163 = vector.broadcast %3 : vector<1x128xf32> to vector<8x128xf32>
    %164 = arith.mulf %162, %163 : vector<8x128xf32>
    %165 = vector.broadcast %4 : vector<1x128xf32> to vector<8x128xf32>
    %166 = arith.addf %164, %165 : vector<8x128xf32>
    %c0_57 = arith.constant 0 : index
    %c0_58 = arith.constant 0 : index
    %167 = vector.load %arg4[%c0_57, %c0_58] : memref<32x128xf32, #tpu.memory_space<vmem>>, vector<32x128xf32>
    %cst_59 = arith.constant dense<0.000000e+00> : vector<8x128xf32>
    %168 = tpu.matmul %154, %167, %cst_59 {dimension_numbers = #tpu.dot_dimension_numbers<[1], [0], [0], [1], [0, 0, 1, 1], [], []>} : vector<8x32xf32>, vector<32x128xf32>, vector<8x128xf32> -> vector<8x128xf32>
    %169 = arith.addf %166, %168 : vector<8x128xf32>
    %170 = arith.negf %169 : vector<8x128xf32>
    %171 = math.exp %170 : vector<8x128xf32>
    %cst_60 = arith.constant 1.000000e+00 : f32
    %172 = vector.broadcast %cst_60 : f32 to vector<8x128xf32>
    %173 = arith.addf %172, %171 : vector<8x128xf32>
    %174 = arith.divf %172, %173 : vector<8x128xf32>
    %175 = math.tanh %169 : vector<8x128xf32>
    %176 = vector.extract_strided_slice %174 {offsets = [0, 0], sizes = [8, 32], strides = [1, 1]} : vector<8x128xf32> to vector<8x32xf32>
    %177 = vector.extract_strided_slice %174 {offsets = [0, 32], sizes = [8, 32], strides = [1, 1]} : vector<8x128xf32> to vector<8x32xf32>
    %178 = vector.extract_strided_slice %175 {offsets = [0, 64], sizes = [8, 32], strides = [1, 1]} : vector<8x128xf32> to vector<8x32xf32>
    %179 = vector.extract_strided_slice %174 {offsets = [0, 96], sizes = [8, 32], strides = [1, 1]} : vector<8x128xf32> to vector<8x32xf32>
    %180 = arith.mulf %177, %152 : vector<8x32xf32>
    %181 = arith.mulf %176, %178 : vector<8x32xf32>
    %182 = arith.addf %180, %181 : vector<8x32xf32>
    %183 = math.tanh %182 : vector<8x32xf32>
    %184 = arith.mulf %179, %183 : vector<8x32xf32>
    %185 = vector.shape_cast %184 : vector<8x32xf32> to vector<8x1x32xf32>
    %c0_61 = arith.constant 0 : index
    %c5 = arith.constant 5 : index
    %c0_62 = arith.constant 0 : index
    %186 = vector.load %arg11[%c0_61, %c5, %c0_62] : memref<8x8x32xf32, #tpu.memory_space<vmem>>, vector<8x1x32xf32>
    tpu.vector_store %arg11[%c0_61, %c5, %c0_62], %185 {strides = array<i32>} : memref<8x8x32xf32, #tpu.memory_space<vmem>>, vector<8x1x32xf32>,
    %c8_i32_63 = arith.constant 8 : i32
    %187 = arith.muli %c0_i32_8, %c8_i32_63 : i32
    %c6_i32 = arith.constant 6 : i32
    %188 = arith.addi %187, %c6_i32 : i32
    %189 = arith.index_cast %188 : i32 to index
    %c0_64 = arith.constant 0 : index
    %c0_65 = arith.constant 0 : index
    %190 = vector.load %arg2[%189, %c0_64, %c0_65] : memref<8x8x1xf32, #tpu.memory_space<vmem>>, vector<1x8x1xf32>
    %191 = vector.shape_cast %190 : vector<1x8x1xf32> to vector<8x1xf32>
    %192 = vector.broadcast %191 : vector<8x1xf32> to vector<8x128xf32>
    %193 = vector.broadcast %3 : vector<1x128xf32> to vector<8x128xf32>
    %194 = arith.mulf %192, %193 : vector<8x128xf32>
    %195 = vector.broadcast %4 : vector<1x128xf32> to vector<8x128xf32>
    %196 = arith.addf %194, %195 : vector<8x128xf32>
    %c0_66 = arith.constant 0 : index
    %c0_67 = arith.constant 0 : index
    %197 = vector.load %arg4[%c0_66, %c0_67] : memref<32x128xf32, #tpu.memory_space<vmem>>, vector<32x128xf32>
    %cst_68 = arith.constant dense<0.000000e+00> : vector<8x128xf32>
    %198 = tpu.matmul %184, %197, %cst_68 {dimension_numbers = #tpu.dot_dimension_numbers<[1], [0], [0], [1], [0, 0, 1, 1], [], []>} : vector<8x32xf32>, vector<32x128xf32>, vector<8x128xf32> -> vector<8x128xf32>
    %199 = arith.addf %196, %198 : vector<8x128xf32>
    %200 = arith.negf %199 : vector<8x128xf32>
    %201 = math.exp %200 : vector<8x128xf32>
    %cst_69 = arith.constant 1.000000e+00 : f32
    %202 = vector.broadcast %cst_69 : f32 to vector<8x128xf32>
    %203 = arith.addf %202, %201 : vector<8x128xf32>
    %204 = arith.divf %202, %203 : vector<8x128xf32>
    %205 = math.tanh %199 : vector<8x128xf32>
    %206 = vector.extract_strided_slice %204 {offsets = [0, 0], sizes = [8, 32], strides = [1, 1]} : vector<8x128xf32> to vector<8x32xf32>
    %207 = vector.extract_strided_slice %204 {offsets = [0, 32], sizes = [8, 32], strides = [1, 1]} : vector<8x128xf32> to vector<8x32xf32>
    %208 = vector.extract_strided_slice %205 {offsets = [0, 64], sizes = [8, 32], strides = [1, 1]} : vector<8x128xf32> to vector<8x32xf32>
    %209 = vector.extract_strided_slice %204 {offsets = [0, 96], sizes = [8, 32], strides = [1, 1]} : vector<8x128xf32> to vector<8x32xf32>
    %210 = arith.mulf %207, %182 : vector<8x32xf32>
    %211 = arith.mulf %206, %208 : vector<8x32xf32>
    %212 = arith.addf %210, %211 : vector<8x32xf32>
    %213 = math.tanh %212 : vector<8x32xf32>
    %214 = arith.mulf %209, %213 : vector<8x32xf32>
    %215 = vector.shape_cast %214 : vector<8x32xf32> to vector<8x1x32xf32>
    %c0_70 = arith.constant 0 : index
    %c6 = arith.constant 6 : index
    %c0_71 = arith.constant 0 : index
    %216 = vector.load %arg11[%c0_70, %c6, %c0_71] : memref<8x8x32xf32, #tpu.memory_space<vmem>>, vector<8x1x32xf32>
    tpu.vector_store %arg11[%c0_70, %c6, %c0_71], %215 {strides = array<i32>} : memref<8x8x32xf32, #tpu.memory_space<vmem>>, vector<8x1x32xf32>,
    %c8_i32_72 = arith.constant 8 : i32
    %217 = arith.muli %c0_i32_8, %c8_i32_72 : i32
    %c7_i32 = arith.constant 7 : i32
    %218 = arith.addi %217, %c7_i32 : i32
    %219 = arith.index_cast %218 : i32 to index
    %c0_73 = arith.constant 0 : index
    %c0_74 = arith.constant 0 : index
    %220 = vector.load %arg2[%219, %c0_73, %c0_74] : memref<8x8x1xf32, #tpu.memory_space<vmem>>, vector<1x8x1xf32>
    %221 = vector.shape_cast %220 : vector<1x8x1xf32> to vector<8x1xf32>
    %222 = vector.broadcast %221 : vector<8x1xf32> to vector<8x128xf32>
    %223 = vector.broadcast %3 : vector<1x128xf32> to vector<8x128xf32>
    %224 = arith.mulf %222, %223 : vector<8x128xf32>
    %225 = vector.broadcast %4 : vector<1x128xf32> to vector<8x128xf32>
    %226 = arith.addf %224, %225 : vector<8x128xf32>
    %c0_75 = arith.constant 0 : index
    %c0_76 = arith.constant 0 : index
    %227 = vector.load %arg4[%c0_75, %c0_76] : memref<32x128xf32, #tpu.memory_space<vmem>>, vector<32x128xf32>
    %cst_77 = arith.constant dense<0.000000e+00> : vector<8x128xf32>
    %228 = tpu.matmul %214, %227, %cst_77 {dimension_numbers = #tpu.dot_dimension_numbers<[1], [0], [0], [1], [0, 0, 1, 1], [], []>} : vector<8x32xf32>, vector<32x128xf32>, vector<8x128xf32> -> vector<8x128xf32>
    %229 = arith.addf %226, %228 : vector<8x128xf32>
    %230 = arith.negf %229 : vector<8x128xf32>
    %231 = math.exp %230 : vector<8x128xf32>
    %cst_78 = arith.constant 1.000000e+00 : f32
    %232 = vector.broadcast %cst_78 : f32 to vector<8x128xf32>
    %233 = arith.addf %232, %231 : vector<8x128xf32>
    %234 = arith.divf %232, %233 : vector<8x128xf32>
    %235 = math.tanh %229 : vector<8x128xf32>
    %236 = vector.extract_strided_slice %234 {offsets = [0, 0], sizes = [8, 32], strides = [1, 1]} : vector<8x128xf32> to vector<8x32xf32>
    %237 = vector.extract_strided_slice %234 {offsets = [0, 32], sizes = [8, 32], strides = [1, 1]} : vector<8x128xf32> to vector<8x32xf32>
    %238 = vector.extract_strided_slice %235 {offsets = [0, 64], sizes = [8, 32], strides = [1, 1]} : vector<8x128xf32> to vector<8x32xf32>
    %239 = vector.extract_strided_slice %234 {offsets = [0, 96], sizes = [8, 32], strides = [1, 1]} : vector<8x128xf32> to vector<8x32xf32>
    %240 = arith.mulf %237, %212 : vector<8x32xf32>
    %241 = arith.mulf %236, %238 : vector<8x32xf32>
    %242 = arith.addf %240, %241 : vector<8x32xf32>
    %243 = math.tanh %242 : vector<8x32xf32>
    %244 = arith.mulf %239, %243 : vector<8x32xf32>
    %245 = vector.shape_cast %244 : vector<8x32xf32> to vector<8x1x32xf32>
    %c0_79 = arith.constant 0 : index
    %c7 = arith.constant 7 : index
    %c0_80 = arith.constant 0 : index
    %246 = vector.load %arg11[%c0_79, %c7, %c0_80] : memref<8x8x32xf32, #tpu.memory_space<vmem>>, vector<8x1x32xf32>
    tpu.vector_store %arg11[%c0_79, %c7, %c0_80], %245 {strides = array<i32>} : memref<8x8x32xf32, #tpu.memory_space<vmem>>, vector<8x1x32xf32>,
    %c8_i32_81 = arith.constant 8 : i32
    %247 = arith.muli %c0_i32_8, %c8_i32_81 : i32
    %248 = tpu.assume_multiple %247, 8 : i32
    %c0_82 = arith.constant 0 : index
    %c0_83 = arith.constant 0 : index
    %c0_84 = arith.constant 0 : index
    %249 = vector.load %arg11[%c0_82, %c0_83, %c0_84] : memref<8x8x32xf32, #tpu.memory_space<vmem>>, vector<8x8x32xf32>
    %c0_85 = arith.constant 0 : index
    %250 = arith.index_cast %248 : i32 to index
    %c0_86 = arith.constant 0 : index
    %251 = vector.load %arg6[%c0_85, %250, %c0_86] : memref<8x8x32xf32, #tpu.memory_space<vmem>>, vector<8x8x32xf32>
    tpu.vector_store %arg6[%c0_85, %250, %c0_86], %249 {strides = array<i32>} : memref<8x8x32xf32, #tpu.memory_space<vmem>>, vector<8x8x32xf32>,
    %c1_i32_87 = arith.constant 1 : i32
    %c0_88 = arith.constant 0 : index
    %c0_89 = arith.constant 0 : index
    %252 = vector.load %arg9[%c0_88, %c0_89] : memref<8x32xf32, #tpu.memory_space<vmem>>, vector<8x32xf32>
    tpu.vector_store %arg9[%c0_88, %c0_89], %244 {strides = array<i32>} : memref<8x32xf32, #tpu.memory_space<vmem>>, vector<8x32xf32>,
    %c0_90 = arith.constant 0 : index
    %c0_91 = arith.constant 0 : index
    %253 = vector.load %arg10[%c0_90, %c0_91] : memref<8x32xf32, #tpu.memory_space<vmem>>, vector<8x32xf32>
    tpu.vector_store %arg10[%c0_90, %c0_91], %242 {strides = array<i32>} : memref<8x32xf32, #tpu.memory_space<vmem>>, vector<8x32xf32>,
    %c0_92 = arith.constant 0 : index
    %c0_93 = arith.constant 0 : index
    %254 = vector.load %arg7[%c0_92, %c0_93] : memref<8x32xf32, #tpu.memory_space<vmem>>, vector<8x32xf32>
    tpu.vector_store %arg7[%c0_92, %c0_93], %244 {strides = array<i32>} : memref<8x32xf32, #tpu.memory_space<vmem>>, vector<8x32xf32>,
    %c0_94 = arith.constant 0 : index
    %c0_95 = arith.constant 0 : index
    %255 = vector.load %arg8[%c0_94, %c0_95] : memref<8x32xf32, #tpu.memory_space<vmem>>, vector<8x32xf32>
    tpu.vector_store %arg8[%c0_94, %c0_95], %242 {strides = array<i32>} : memref<8x32xf32, #tpu.memory_space<vmem>>, vector<8x32xf32>,
    return
  }
  func.func @transform_0(%arg0: i32, %arg1: i32) -> (i32, i32, i32) {
    %c0_i32 = arith.constant 0 : i32
    %c0_i32_0 = arith.constant 0 : i32
    return %arg1, %arg0, %c0_i32 : i32, i32, i32
  }
  func.func @transform_1(%arg0: i32, %arg1: i32) -> (i32, i32) {
    %c0_i32 = arith.constant 0 : i32
    %c0_i32_0 = arith.constant 0 : i32
    %c0_i32_1 = arith.constant 0 : i32
    return %c0_i32, %c0_i32_0 : i32, i32
  }
  func.func @transform_2(%arg0: i32, %arg1: i32) -> (i32, i32) {
    %c0_i32 = arith.constant 0 : i32
    %c0_i32_0 = arith.constant 0 : i32
    %c0_i32_1 = arith.constant 0 : i32
    return %c0_i32, %c0_i32_0 : i32, i32
  }
  func.func @transform_3(%arg0: i32, %arg1: i32) -> (i32, i32) {
    %c0_i32 = arith.constant 0 : i32
    %c0_i32_0 = arith.constant 0 : i32
    %c0_i32_1 = arith.constant 0 : i32
    return %c0_i32, %c0_i32_0 : i32, i32
  }
  func.func @transform_4(%arg0: i32, %arg1: i32) -> (i32, i32, i32) {
    %c0_i32 = arith.constant 0 : i32
    %c0_i32_0 = arith.constant 0 : i32
    return %arg0, %arg1, %c0_i32 : i32, i32, i32
  }
  func.func @transform_5(%arg0: i32, %arg1: i32) -> (i32, i32) {
    %c0_i32 = arith.constant 0 : i32
    %c0_i32_0 = arith.constant 0 : i32
    return %arg0, %c0_i32 : i32, i32
  }
  func.func @transform_6(%arg0: i32, %arg1: i32) -> (i32, i32) {
    %c0_i32 = arith.constant 0 : i32
    %c0_i32_0 = arith.constant 0 : i32
    return %arg0, %c0_i32 : i32, i32
  }
}

</mosaic_0001>

<bundles_post_ra>
// kernel: encoder_forward.1
= control target key start
LH: loop header
LB: loop body
LE: loop exit
PB: predicated region body
PF: predicated region fallthrough
CT: control target
= control target key end

     0   :  { %vm24_vm0 = vcmask 261120   ;;  %v2120_v0 = vmov 0.0   ;;  %vm2121_vm1 = vmmov 0   ;;  %v2122_v3 = vmov 0   ;;  %s2124_s11 = smov 64   ;;  %s2772_s2 = inlined_call_operand.vmem [shape: f32[32,128], index: 2, kind: input, shape index: {}]   ;;  %s2773_s0 = inlined_call_operand.vmem [shape: f32[8,8,1], index: 0, kind: input, shape index: {}]   ;;  %s2774_s1 = inlined_call_operand.vmem [shape: f32[1,128], index: 1, kind: input, shape index: {}]   ;;  %s2775_s3 = inlined_call_operand.vmem [shape: f32[1,128], index: 3, kind: input, shape index: {}]   ;;  %s2776_s4 = inlined_call_operand.vmem [shape: f32[8,8,32], index: 4, kind: output, shape index: {0}]   ;;  %s2777_s5 = inlined_call_operand.vmem [shape: f32[8,32], index: 5, kind: output, shape index: {1}]   ;;  %s2778_s6 = inlined_call_operand.vmem [shape: f32[8,32], index: 6, kind: output, shape index: {2}]  }
   0x1   :  { %1959 = vmatprep.subr.mxu0 %v2120_v0  ;;  %v2166_v1 = vld [vmem:[%s2772_s2 + $0x18] sm:$0xff]  ;;  %v2171_v2 = vld [vmem:[%s2772_s2 + $0x10] sm:$0xff]  ;;  %1967 = vmatprep.mubr.msk.f32.mxu0 %vm2121_vm1, %v2120_v0  ;;  %25 = vst.msk [vmem:[#allocation2] sm:$0xff] %vm24_vm0, %v2120_v0  ;;  %26 = vst.msk [vmem:[#allocation3] sm:$0xff] %vm24_vm0, %v2120_v0  ;;  %vm264_vm2 = vcmask 253952  }
   0x2   :  { %1960 = vmatpush3.msra.mxu0 %v2166_v1  ;;  %2054 = vset.pattern.permute.xlu0 %v2122_v3  ;;  %v31_v4 = vld [vmem:[%s2773_s0] sm:$0xff]  ;;  %v2187_v5 = vld [vmem:[%s2772_s2 + $0x8] sm:$0xff]  ;;  %v1901_v50 = vld [vmem:[%s2773_s0 + $0x10] sm:$0xff] }
   0x3   :  { %1961 = vmatprep.subr.mxu0 %v2120_v0  ;;  %34 = vperm.xlu0 %2054, %v31_v4   ;;  %v2195_v6 = vld [vmem:[%s2772_s2] sm:$0xff]  ;;  %s2123_s2 = smov 32   ;;  %v1898_v29 = vld [vmem:[%s2773_s0 + $0x8] sm:$0xff] }
   0x4   :  { %1962 = vmatpush3.msra.mxu0 %v2171_v2  ;;  %1970 = vmatprep.subr.mxu1 %v2120_v0  ;;  %v2226_v9 = vld [vmem:[%s2774_s1] ss:$0 sm:$0xff] }
   0x5   :  { %1963 = vmatprep.subr.mxu0 %v2120_v0  ;;  %1971 = vmatpush3.msra.mxu1 %v2166_v1  ;;  %v2232_v12 = vld [vmem:[%s2775_s3] ss:$0 sm:$0xff] }
   0x6   :  { %1964 = vmatpush3.msra.mxu0 %v2187_v5  ;;  %1972 = vmatprep.subr.mxu1 %v2120_v0 }
   0x7   :  { %1965 = vmatprep.subr.mxu0 %v2120_v0  ;;  %1973 = vmatpush3.msra.mxu1 %v2171_v2 }
   0x8   :  { %1966 = vmatpush3.msra.mxu0 %v2195_v6  ;;  %v29_v7 = vld [vmem:[#allocation2] sm:$0xff]  ;;  %v30_v8 = vld [vmem:[#allocation3] sm:$0xff]  ;;  %1974 = vmatprep.subr.mxu1 %v2120_v0 }
   0x9   :  { %1968 = vmatmul.mubr.msk.f32.vlgmr.msra.gmra.mxu0 %vm24_vm0, %v29_v7  ;;  %138 = vrot.lane.b32.xlu1 %v30_v8, %s2123_s2 }
   0xa   :  { %1975 = vmatpush3.msra.mxu1 %v2187_v5  ;;  %1978 = vmatprep.mubr.msk.f32.mxu1 %vm2121_vm1, %v2120_v0 }
   0xb   :  { %1976 = vmatprep.subr.mxu1 %v2120_v0  ;;  %1981 = vmatprep.subr.mxu0 %v2120_v0 }
   0xc   :  { %1977 = vmatpush3.msra.mxu1 %v2195_v6  ;;  %1982 = vmatpush3.msra.mxu0 %v2166_v1 }
   0xd   :  { %1983 = vmatprep.subr.mxu0 %v2120_v0  ;;  %1989 = vmatprep.mubr.msk.f32.mxu0 %vm2121_vm1, %v2120_v0 }
   0xe   :  { %1984 = vmatpush3.msra.mxu0 %v2171_v2  ;;  %2055 = vset.pattern.permute.xlu1 %v2122_v3 }
   0xf   :  { %1985 = vmatprep.subr.mxu0 %v2120_v0  ;;  %1992 = vmatprep.subr.mxu1 %v2120_v0 }
  0x10   :  { %1986 = vmatpush3.msra.mxu0 %v2187_v5 }
  0x11   :  { %1987 = vmatprep.subr.mxu0 %v2120_v0 }
  0x12   :  { %1988 = vmatpush3.msra.mxu0 %v2195_v6 }
  0x13   :  { %2003 = vmatprep.subr.mxu0 %v2120_v0 }
  0x7b   :  { %v139_v24 = vpop.permute.xlu1 %138 }
  0x7e   :  { %v35_v10 = vpop.permute.xlu0 %34 }
  0x7f   :  { %v43_v11 = vmul.f32 %v2226_v9, %v35_v10 }
  0x81   :  { %v50_v13 = vadd.f32 %v2232_v12, %v43_v11 }
  0xc9   :  { %v125_v14 = vpop.f32.mrf.mxu0 }
  0xca   :  { %v129_v15 = vadd.f32 %v125_v14, %v50_v13  ;;  %v1904_v14 = vld [vmem:[%s2773_s0 + $0x18] sm:$0xff] }
  0xcb   :  { %v1969_v16 = vpop.f32.mrf.mxu0 }
  0xcc   :  { %2056 = vtanh.f32 %v129_v15  ;;  %v1897_v18 = vmul.f32 -1.442695, %v129_v15 }
  0xce   :  { %2058 = vpow2.f32 %v1897_v18 }
  0xd9   :  { %v2057_v17 = vpop.eup %2056 }
  0xda   :  { %143 = vrot.lane.b32.xlu0 %v2057_v17, %s2124_s11 }
  0xdb   :  { %v2059_v19 = vpop.eup %2058 }
  0xdc   :  { %v133_v20 = vadd.f32 1.0, %v2059_v19 }
  0xde   :  { %2060 = vrcp.f32 %v133_v20 }
  0xeb   :  { %v2061_v21 = vpop.eup %2060 }
  0xec   :  { %v141_v25 = vmul.f32 %v2061_v21, %v139_v24 }
 0x14c   :  { %v144_v22 = vpop.permute.xlu0 %143 }
 0x14d   :  { %v146_v23 = vmul.f32 %v2061_v21, %v144_v22 }
 0x14f   :  { %148 = vrot.lane.b32.xlu1 %v146_v23, %s2123_s2 }
 0x1c1   :  { %v149_v26 = vpop.permute.xlu1 %148 }
 0x1c2   :  { %v151_v27 = vadd.f32 %v149_v26, %v141_v25 }
 0x1c4   :  { %2062 = vtanh.f32 %v151_v27 }
 0x1d1   :  { %v2063_v28 = vpop.eup %2062 }
 0x1d2   :  { %154 = vrot.lane.b32.xlu0 %v2063_v28, %s2124_s11 }
 0x1d6   :  { %277 = vperm.xlu0 %2054, %v1898_v29  }
 0x244   :  { %v155_v30 = vpop.permute.xlu0 %154 }
 0x245   :  { %v2241_v31 = vmul.f32 %v2061_v21, %v155_v30 }
 0x247   :  { %286 = vrot.lane.b32.xlu1 %v2241_v31, %s2123_s2 }
 0x251   :  { %v278_v33 = vpop.permute.xlu0 %277 }
 0x252   :  { %v280_v34 = vmul.f32 %v2226_v9, %v278_v33 }
 0x254   :  { %v281_v35 = vadd.f32 %v2232_v12, %v280_v34 }
 0x2b9   :  { %v287_v32 = vpop.permute.xlu1 %286 }
 0x2ba   :  { %1979 = vmatmul.mubr.msk.f32.vlgmr.msra.gmra.mxu1 %vm24_vm0, %v287_v32 }
 0x2bb   :  { %1993 = vmatpush3.msra.mxu1 %v2166_v1  ;;  %2000 = vmatprep.mubr.msk.f32.mxu1 %vm2121_vm1, %v2120_v0 }
 0x2bc   :  { %1994 = vmatprep.subr.mxu1 %v2120_v0 }
 0x2bd   :  { %1995 = vmatpush3.msra.mxu1 %v2171_v2 }
 0x2be   :  { %1996 = vmatprep.subr.mxu1 %v2120_v0 }
 0x2bf   :  { %1997 = vmatpush3.msra.mxu1 %v2187_v5 }
 0x2c0   :  { %1998 = vmatprep.subr.mxu1 %v2120_v0 }
 0x2c1   :  { %1999 = vmatpush3.msra.mxu1 %v2195_v6 }
 0x2c2   :  { %2014 = vmatprep.subr.mxu1 %v2120_v0 }
 0x37a   :  { %v356_v36 = vpop.f32.mrf.mxu1 }
 0x37b   :  { %v360_v37 = vadd.f32 %v356_v36, %v281_v35  ;;  %v1907_v36 = vld [vmem:[%s2773_s0 + $0x20] sm:$0xff] }
 0x37c   :  { %v1980_v38 = vpop.f32.mrf.mxu1 }
 0x37d   :  { %2064 = vtanh.f32 %v360_v37  ;;  %v1900_v40 = vmul.f32 -1.442695, %v360_v37 }
 0x37f   :  { %2066 = vpow2.f32 %v1900_v40 }
 0x38a   :  { %v2065_v39 = vpop.eup %2064 }
 0x38b   :  { %370 = vrot.lane.b32.xlu1 %v2065_v39, %s2124_s11 }
 0x38c   :  { %v2067_v41 = vpop.eup %2066 }
 0x38d   :  { %v364_v42 = vadd.f32 1.0, %v2067_v41 }
 0x38f   :  { %2068 = vrcp.f32 %v364_v42 }
 0x39c   :  { %v2069_v43 = vpop.eup %2068 }
 0x39d   :  { %v368_v46 = vmul.f32 %v2069_v43, %v151_v27 }
 0x3fd   :  { %v371_v44 = vpop.permute.xlu1 %370 }
 0x3fe   :  { %v373_v45 = vmul.f32 %v2069_v43, %v371_v44 }
 0x400   :  { %375 = vrot.lane.b32.xlu0 %v373_v45, %s2123_s2 }
 0x472   :  { %v376_v47 = vpop.permute.xlu0 %375 }
 0x473   :  { %v378_v48 = vadd.f32 %v376_v47, %v368_v46 }
 0x475   :  { %2070 = vtanh.f32 %v378_v48 }
 0x482   :  { %v2071_v49 = vpop.eup %2070 }
 0x483   :  { %381 = vrot.lane.b32.xlu1 %v2071_v49, %s2124_s11 }
 0x487   :  { %503 = vperm.xlu1 %2055, %v1901_v50  }
 0x4f5   :  { %v382_v51 = vpop.permute.xlu1 %381 }
 0x4f6   :  { %v2264_v52 = vmul.f32 %v2069_v43, %v382_v51 }
 0x4f8   :  { %512 = vrot.lane.b32.xlu0 %v2264_v52, %s2123_s2 }
 0x502   :  { %v504_v54 = vpop.permute.xlu1 %503 }
 0x503   :  { %v506_v55 = vmul.f32 %v2226_v9, %v504_v54 }
 0x505   :  { %v507_v56 = vadd.f32 %v2232_v12, %v506_v55 }
 0x56a   :  { %v513_v53 = vpop.permute.xlu0 %512 }
 0x56b   :  { %1990 = vmatmul.mubr.msk.f32.vlgmr.msra.gmra.mxu0 %vm24_vm0, %v513_v53 }
 0x56c   :  { %2004 = vmatpush3.msra.mxu0 %v2166_v1  ;;  %2011 = vmatprep.mubr.msk.f32.mxu0 %vm2121_vm1, %v2120_v0 }
 0x56d   :  { %2005 = vmatprep.subr.mxu0 %v2120_v0 }
 0x56e   :  { %2006 = vmatpush3.msra.mxu0 %v2171_v2 }
 0x56f   :  { %2007 = vmatprep.subr.mxu0 %v2120_v0 }
 0x570   :  { %2008 = vmatpush3.msra.mxu0 %v2187_v5 }
 0x571   :  { %2009 = vmatprep.subr.mxu0 %v2120_v0 }
 0x572   :  { %2010 = vmatpush3.msra.mxu0 %v2195_v6 }
 0x573   :  { %2025 = vmatprep.subr.mxu0 %v2120_v0 }
 0x62b   :  { %v582_v57 = vpop.f32.mrf.mxu0 }
 0x62c   :  { %v586_v58 = vadd.f32 %v582_v57, %v507_v56 }
 0x62d   :  { %v1991_v59 = vpop.f32.mrf.mxu0 }
 0x62e   :  { %2072 = vtanh.f32 %v586_v58  ;;  %v1903_v61 = vmul.f32 -1.442695, %v586_v58  ;;  %v1910_v58 = vld [vmem:[%s2773_s0 + $0x28] sm:$0xff] }
 0x630   :  { %2074 = vpow2.f32 %v1903_v61 }
 0x63b   :  { %v2073_v60 = vpop.eup %2072 }
 0x63c   :  { %596 = vrot.lane.b32.xlu0 %v2073_v60, %s2124_s11 }
 0x63d   :  { %v2075_v62 = vpop.eup %2074 }
 0x63e   :  { %v590_v63 = vadd.f32 1.0, %v2075_v62 }
 0x640   :  { %2076 = vrcp.f32 %v590_v63 }
 0x64d   :  { %v2077_v3 = vpop.eup %2076 }
 0x64e   :  { %v594_v8 = vmul.f32 %v2077_v3, %v378_v48 }
 0x6ae   :  { %v597_v4 = vpop.permute.xlu0 %596 }
 0x6af   :  { %v599_v7 = vmul.f32 %v2077_v3, %v597_v4 }
 0x6b1   :  { %601 = vrot.lane.b32.xlu1 %v599_v7, %s2123_s2 }
 0x723   :  { %v602_v10 = vpop.permute.xlu1 %601 }
 0x724   :  { %v604_v11 = vadd.f32 %v602_v10, %v594_v8 }
 0x726   :  { %2078 = vtanh.f32 %v604_v11 }
 0x733   :  { %v2079_v13 = vpop.eup %2078 }
 0x734   :  { %607 = vrot.lane.b32.xlu0 %v2079_v13, %s2124_s11 }
 0x738   :  { %729 = vperm.xlu0 %2054, %v1904_v14  }
 0x7a6   :  { %v608_v15 = vpop.permute.xlu0 %607 }
 0x7a7   :  { %v2287_v16 = vmul.f32 %v2077_v3, %v608_v15 }
 0x7a9   :  { %738 = vrot.lane.b32.xlu1 %v2287_v16, %s2123_s2 }
 0x7b3   :  { %v730_v18 = vpop.permute.xlu0 %729 }
 0x7b4   :  { %v732_v19 = vmul.f32 %v2226_v9, %v730_v18  ;;  %v1913_v18 = vld [vmem:[%s2773_s0 + $0x30] sm:$0xff] }
 0x7b6   :  { %v733_v20 = vadd.f32 %v2232_v12, %v732_v19 }
 0x81b   :  { %v739_v17 = vpop.permute.xlu1 %738 }
 0x81c   :  { %2001 = vmatmul.mubr.msk.f32.vlgmr.msra.gmra.mxu1 %vm24_vm0, %v739_v17 }
 0x81d   :  { %2015 = vmatpush3.msra.mxu1 %v2166_v1  ;;  %2022 = vmatprep.mubr.msk.f32.mxu1 %vm2121_vm1, %v2120_v0 }
 0x81e   :  { %2016 = vmatprep.subr.mxu1 %v2120_v0 }
 0x81f   :  { %2017 = vmatpush3.msra.mxu1 %v2171_v2 }
 0x820   :  { %2018 = vmatprep.subr.mxu1 %v2120_v0 }
 0x821   :  { %2019 = vmatpush3.msra.mxu1 %v2187_v5 }
 0x822   :  { %2020 = vmatprep.subr.mxu1 %v2120_v0 }
 0x823   :  { %2021 = vmatpush3.msra.mxu1 %v2195_v6 }
 0x824   :  { %2036 = vmatprep.subr.mxu1 %v2120_v0 }
 0x8dc   :  { %v808_v21 = vpop.f32.mrf.mxu1 }
 0x8dd   :  { %v812_v22 = vadd.f32 %v808_v21, %v733_v20 }
 0x8de   :  { %v2002_v23 = vpop.f32.mrf.mxu1 }
 0x8df   :  { %2080 = vtanh.f32 %v812_v22  ;;  %v1906_v25 = vmul.f32 -1.442695, %v812_v22 }
 0x8e1   :  { %2082 = vpow2.f32 %v1906_v25 }
 0x8ec   :  { %v2081_v24 = vpop.eup %2080 }
 0x8ed   :  { %822 = vrot.lane.b32.xlu1 %v2081_v24, %s2124_s11 }
 0x8ee   :  { %v2083_v26 = vpop.eup %2082 }
 0x8ef   :  { %v816_v27 = vadd.f32 1.0, %v2083_v26 }
 0x8f1   :  { %2084 = vrcp.f32 %v816_v27 }
 0x8fe   :  { %v2085_v28 = vpop.eup %2084 }
 0x8ff   :  { %v820_v32 = vmul.f32 %v2085_v28, %v604_v11 }
 0x95f   :  { %v823_v29 = vpop.permute.xlu1 %822 }
 0x960   :  { %v825_v30 = vmul.f32 %v2085_v28, %v823_v29 }
 0x962   :  { %827 = vrot.lane.b32.xlu0 %v825_v30, %s2123_s2 }
 0x9d4   :  { %v828_v33 = vpop.permute.xlu0 %827 }
 0x9d5   :  { %v830_v34 = vadd.f32 %v828_v33, %v820_v32 }
 0x9d7   :  { %2086 = vtanh.f32 %v830_v34 }
 0x9e4   :  { %v2087_v35 = vpop.eup %2086 }
 0x9e5   :  { %833 = vrot.lane.b32.xlu1 %v2087_v35, %s2124_s11 }
 0x9e9   :  { %955 = vperm.xlu1 %2055, %v1907_v36  }
 0xa57   :  { %v834_v37 = vpop.permute.xlu1 %833 }
 0xa58   :  { %v2310_v38 = vmul.f32 %v2085_v28, %v834_v37 }
 0xa5a   :  { %964 = vrot.lane.b32.xlu0 %v2310_v38, %s2123_s2 }
 0xa64   :  { %v956_v40 = vpop.permute.xlu1 %955 }
 0xa65   :  { %v958_v41 = vmul.f32 %v2226_v9, %v956_v40 }
 0xa67   :  { %v959_v42 = vadd.f32 %v2232_v12, %v958_v41  ;;  %v1916_v41 = vld [vmem:[%s2773_s0 + $0x38] sm:$0xff]  ;;  %s2126_s0 = smov 96  }
 0xacc   :  { %v965_v39 = vpop.permute.xlu0 %964 }
 0xacd   :  { %2012 = vmatmul.mubr.msk.f32.vlgmr.msra.gmra.mxu0 %vm24_vm0, %v965_v39 }
 0xace   :  { %2026 = vmatpush3.msra.mxu0 %v2166_v1  ;;  %2033 = vmatprep.mubr.msk.f32.mxu0 %vm2121_vm1, %v2120_v0 }
 0xacf   :  { %2027 = vmatprep.subr.mxu0 %v2120_v0 }
 0xad0   :  { %2028 = vmatpush3.msra.mxu0 %v2171_v2 }
 0xad1   :  { %2029 = vmatprep.subr.mxu0 %v2120_v0 }
 0xad2   :  { %2030 = vmatpush3.msra.mxu0 %v2187_v5 }
 0xad3   :  { %2031 = vmatprep.subr.mxu0 %v2120_v0 }
 0xad4   :  { %2032 = vmatpush3.msra.mxu0 %v2195_v6 }
 0xb8d   :  { %v1034_v43 = vpop.f32.mrf.mxu0 }
 0xb8e   :  { %v1038_v44 = vadd.f32 %v1034_v43, %v959_v42 }
 0xb8f   :  { %v2013_v45 = vpop.f32.mrf.mxu0 }
 0xb90   :  { %2088 = vtanh.f32 %v1038_v44  ;;  %v1909_v47 = vmul.f32 -1.442695, %v1038_v44 }
 0xb92   :  { %2090 = vpow2.f32 %v1909_v47 }
 0xb9d   :  { %v2089_v46 = vpop.eup %2088 }
 0xb9e   :  { %1048 = vrot.lane.b32.xlu0 %v2089_v46, %s2124_s11  ;;  %v2125_v46 = vmov 1966171168  }
 0xb9f   :  { %v2091_v48 = vpop.eup %2090  ;;  %v161_v47 = vunpack.c.l.s4 %v2125_v46 }
 0xba0   :  { %v1042_v49 = vadd.f32 1.0, %v2091_v48  ;;  %v163_v48 = vlaneseq }
 0xba2   :  { %2092 = vrcp.f32 %v1042_v49 }
 0xbaf   :  { %v2093_v50 = vpop.eup %2092 }
 0xbb0   :  { %v1046_v54 = vmul.f32 %v2093_v50, %v830_v34 }
 0xc10   :  { %v1049_v51 = vpop.permute.xlu0 %1048 }
 0xc11   :  { %v1051_v53 = vmul.f32 %v2093_v50, %v1049_v51  ;;  %v164_v51 = vshrl.u32 %v163_v48, 7 }
 0xc13   :  { %1053 = vrot.lane.b32.xlu1 %v1051_v53, %s2123_s2 }
 0xc85   :  { %v1054_v55 = vpop.permute.xlu1 %1053 }
 0xc86   :  { %v1056_v56 = vadd.f32 %v1054_v55, %v1046_v54 }
 0xc88   :  { %2094 = vtanh.f32 %v1056_v56 }
 0xc95   :  { %v2095_v57 = vpop.eup %2094 }
 0xc96   :  { %1059 = vrot.lane.b32.xlu0 %v2095_v57, %s2124_s11 }
 0xc9a   :  { %1181 = vperm.xlu0 %2054, %v1910_v58  }
 0xd08   :  { %v1060_v59 = vpop.permute.xlu0 %1059 }
 0xd09   :  { %v2332_v60 = vmul.f32 %v2093_v50, %v1060_v59  ;;  %v162_v50 = vunpack.c.0.s8 %v161_v47  ;;  %v159_v59 = vcombine.high %v2241_v31, %v2241_v31 }
 0xd0b   :  { %1190 = vrot.lane.b32.xlu1 %v2332_v60, %s2123_s2  ;;  %v2379_v57 = vsub.s32 %v162_v50, %v164_v51 }
 0xd0d   :  { %v2384_v58 = vrot.slane %v2241_v31, %v2379_v57  ;;  %v2403_v31 = vrot.slane %v2264_v52, %v2379_v57 }
 0xd15   :  { %v1182_v62 = vpop.permute.xlu0 %1181 }
 0xd16   :  { %v1184_v63 = vmul.f32 %v2226_v9, %v1182_v62 }
 0xd7d   :  { %v1191_v61 = vpop.permute.xlu1 %1190 }
 0xd7e   :  { %2023 = vmatmul.mubr.msk.f32.vlgmr.msra.gmra.mxu1 %vm24_vm0, %v1191_v61 }
 0xd7f   :  { %2037 = vmatpush3.msra.mxu1 %v2166_v1  ;;  %2044 = vmatprep.mubr.msk.f32.mxu1 %vm2121_vm1, %v2120_v0  ;;  %v1185_v1 = vadd.f32 %v2232_v12, %v1184_v63  ;;  %v2395_v63 = vsub.s32 0, %v164_v51  ;;  %v182_v51 = vrot.slane %v2384_v58, %v2379_v57 }
 0xd80   :  { %2038 = vmatprep.subr.mxu1 %v2120_v0 }
 0xd81   :  { %2039 = vmatpush3.msra.mxu1 %v2171_v2 }
 0xd82   :  { %2040 = vmatprep.subr.mxu1 %v2120_v0 }
 0xd83   :  { %2041 = vmatpush3.msra.mxu1 %v2187_v5 }
 0xd84   :  { %2042 = vmatprep.subr.mxu1 %v2120_v0 }
 0xd85   :  { %2043 = vmatpush3.msra.mxu1 %v2195_v6 }
 0xe3e   :  { %v1260_v3 = vpop.f32.mrf.mxu1 }
 0xe3f   :  { %v1264_v4 = vadd.f32 %v1260_v3, %v1185_v1 }
 0xe40   :  { %v2024_v7 = vpop.f32.mrf.mxu1 }
 0xe41   :  { %2096 = vtanh.f32 %v1264_v4  ;;  %v1912_v2 = vmul.f32 -1.442695, %v1264_v4 }
 0xe43   :  { %2098 = vpow2.f32 %v1912_v2  ;;  %v386_v2 = vcombine.high %v2264_v52, %v2264_v52 }
 0xe4e   :  { %v2097_v8 = vpop.eup %2096 }
 0xe4f   :  { %1274 = vrot.lane.b32.xlu1 %v2097_v8, %s2124_s11 }
 0xe50   :  { %v2099_v10 = vpop.eup %2098 }
 0xe51   :  { %v1268_v5 = vadd.f32 1.0, %v2099_v10  ;;  %v401_v10 = vcombine.high %v2403_v31, %v2403_v31 }
 0xe53   :  { %2100 = vrcp.f32 %v1268_v5 }
 0xe60   :  { %v2101_v0 = vpop.eup %2100 }
 0xe61   :  { %v1272_v13 = vmul.f32 %v2101_v0, %v1056_v56 }
 0xec1   :  { %v1275_v11 = vpop.permute.xlu1 %1274 }
 0xec2   :  { %v1277_v6 = vmul.f32 %v2101_v0, %v1275_v11  ;;  %v2415_v11 = vrot.slane %v386_v2, %v2379_v57 }
 0xec4   :  { %1279 = vrot.lane.b32.xlu0 %v1277_v6, %s2123_s2 }
 0xf36   :  { %v1280_v14 = vpop.permute.xlu0 %1279 }
 0xf37   :  { %v1282_v15 = vadd.f32 %v1280_v14, %v1272_v13  ;;  %v423_v13 = vrot.slane %v401_v10, %v2379_v57 }
 0xf39   :  { %2102 = vtanh.f32 %v1282_v15  ;;  %v442_v14 = vrot.slane %v423_v13, %v2395_v63  ;;  %v433_v52 = vcombine.high %v423_v13, %v423_v13 }
 0xf46   :  { %v2103_v17 = vpop.eup %2102 }
 0xf47   :  { %1285 = vrot.lane.b32.xlu1 %v2103_v17, %s2124_s11  ;;  %v2426_v17 = vrot.slane %v2287_v16, %v2379_v57 }
 0xf4b   :  { %1407 = vperm.xlu1 %2055, %v1913_v18   ;;  %v450_v18 = vrot.slane %v433_v52, %v2395_v63  ;;  %v635_v52 = vrot.slane %v2426_v17, %v2379_v57 }
 0xfb9   :  { %v1286_v19 = vpop.permute.xlu1 %1285 }
 0xfba   :  { %v2354_v20 = vmul.f32 %v2101_v0, %v1286_v19 }
 0xfbc   :  { %1416 = vrot.lane.b32.xlu0 %v2354_v20, %s2123_s2 }
 0xfc6   :  { %v1408_v22 = vpop.permute.xlu1 %1407 }
 0xfc7   :  { %v1410_v23 = vmul.f32 %v2226_v9, %v1408_v22  ;;  %v627_v22 = vcombine.high %v2426_v17, %v2426_v17 }
 0xfc9   :  { %v1411_v24 = vadd.f32 %v2232_v12, %v1410_v23 }
0x102e   :  { %v1417_v21 = vpop.permute.xlu0 %1416 }
0x102f   :  { %2034 = vmatmul.mubr.msk.f32.vlgmr.msra.gmra.mxu0 %vm24_vm0, %v1417_v21  ;;  %v612_v21 = vcombine.high %v2287_v16, %v2287_v16 }
0x10ef   :  { %v1486_v25 = vpop.f32.mrf.mxu0 }
0x10f0   :  { %v1490_v26 = vadd.f32 %v1486_v25, %v1411_v24  ;;  %v2438_v25 = vrot.slane %v612_v21, %v2379_v57 }
0x10f1   :  { %v2035_v27 = vpop.f32.mrf.mxu0 }
0x10f2   :  { %2104 = vtanh.f32 %v1490_v26  ;;  %v1915_v29 = vmul.f32 -1.442695, %v1490_v26  ;;  %v649_v27 = vrot.slane %v627_v22, %v2379_v57  ;;  %v642_v22 = vrot.slane %v2438_v25, %v2379_v57 }
0x10f4   :  { %2106 = vpow2.f32 %v1915_v29  ;;  %v659_v16 = vcombine.high %v649_v27, %v649_v27  ;;  %v628_v29 = vcombine.high %v2438_v25, %v2438_v25 }
0x10ff   :  { %v2105_v28 = vpop.eup %2104 }
0x1100   :  { %1500 = vrot.lane.b32.xlu0 %v2105_v28, %s2124_s11  ;;  %v668_v28 = vrot.slane %v649_v27, %v2395_v63  ;;  %v838_v27 = vcombine.high %v2310_v38, %v2310_v38 }
0x1101   :  { %v2107_v30 = vpop.eup %2106 }
0x1102   :  { %v1494_v32 = vadd.f32 1.0, %v2107_v30  ;;  %v2449_v30 = vrot.slane %v2310_v38, %v2379_v57 }
0x1104   :  { %2108 = vrcp.f32 %v1494_v32  ;;  %v676_v32 = vrot.slane %v659_v16, %v2395_v63  ;;  %v861_v25 = vrot.slane %v2449_v30, %v2379_v57 }
0x1111   :  { %v2109_v33 = vpop.eup %2108 }
0x1112   :  { %v1498_v36 = vmul.f32 %v2109_v33, %v1282_v15  ;;  %v402_v15 = vcombine.high %v2415_v11, %v2415_v11 }
0x1114   :  { %v430_v19 = vrot.slane %v402_v15, %v2379_v57  ;;  %v664_v15 = vrot.slane %v635_v52, %v2395_v63 }
0x1116   :  { %v458_v23 = vrot.slane %v430_v19, %v2395_v63  ;;  %v434_v24 = vcombine.high %v430_v19, %v430_v19 }
0x1118   :  { %v466_v26 = vrot.slane %v434_v24, %v2395_v63  ;;  %v658_v24 = vcombine.high %v642_v22, %v642_v22 }
0x1172   :  { %v1501_v34 = vpop.permute.xlu0 %1500 }
0x1173   :  { %v1503_v35 = vmul.f32 %v2109_v33, %v1501_v34  ;;  %v853_v34 = vcombine.high %v2449_v30, %v2449_v30 }
0x1175   :  { %1505 = vrot.lane.b32.xlu1 %v1503_v35, %s2123_s2 }
0x11e7   :  { %v1506_v37 = vpop.permute.xlu1 %1505 }
0x11e8   :  { %v2363_v39 = vadd.f32 %v1506_v37, %v1498_v36 }
0x11ea   :  { %2110 = vtanh.f32 %v2363_v39 }
0x11f7   :  { %v2111_v40 = vpop.eup %2110 }
0x11f8   :  { %1511 = vrot.lane.b32.xlu0 %v2111_v40, %s2124_s11  ;;  %v875_v40 = vrot.slane %v853_v34, %v2379_v57 }
0x11fc   :  { %1633 = vperm.xlu0 %2054, %v1916_v41   ;;  %v894_v41 = vrot.slane %v875_v40, %v2395_v63 }
0x126a   :  { %v1512_v42 = vpop.permute.xlu0 %1511 }
0x126b   :  { %v2370_v43 = vmul.f32 %v2109_v33, %v1512_v42  ;;  %v656_v33 = vrot.slane %v628_v29, %v2379_v57  ;;  %v885_v42 = vcombine.high %v875_v40, %v875_v40  ;;  %v2523_v29 = vrot.slane %v838_v27, %v2379_v57 }
0x126c   :  { %v1064_v40 = vcombine.high %v2332_v60, %v2332_v60 }
0x126d   :  { %1642 = vrot.lane.b32.xlu1 %v2370_v43, %s2123_s2  ;;  %v684_v35 = vrot.slane %v656_v33, %v2395_v63  ;;  %v660_v36 = vcombine.high %v656_v33, %v656_v33  ;;  %v883_v33 = vcombine.high %v861_v25, %v861_v25  ;;  %v868_v30 = vrot.slane %v2523_v29, %v2379_v57 }
0x126f   :  { %v692_v37 = vrot.slane %v660_v36, %v2395_v63  ;;  %v898_v34 = vrot.slane %v883_v33, %v2395_v63  ;;  %v906_v36 = vrot.slane %v868_v30, %v2395_v63 }
0x1277   :  { %v1634_v45 = vpop.permute.xlu0 %1633 }
0x1278   :  { %v1636_v49 = vmul.f32 %v2226_v9, %v1634_v45  ;;  %v174_v9 = vcombine.high %v2384_v58, %v2384_v58 }
0x127a   :  { %v1637_v53 = vadd.f32 %v2232_v12, %v1636_v49  ;;  %v2391_v12 = vrot.slane %v159_v59, %v2379_v57  ;;  %v196_v61 = vrot.slane %v174_v9, %v2379_v57 }
0x127c   :  { %v215_v1 = vrot.slane %v196_v61, %v2395_v63  ;;  %v206_v3 = vcombine.high %v196_v61, %v196_v61  ;;  %v175_v4 = vcombine.high %v2391_v12, %v2391_v12  ;;  %v189_v9 = vrot.slane %v2391_v12, %v2379_v57 }
0x127e   :  { %v223_v7 = vrot.slane %v206_v3, %v2395_v63  ;;  %v203_v8 = vrot.slane %v175_v4, %v2379_v57  ;;  %v227_v61 = vrot.slane %v189_v9, %v2395_v63  ;;  %v409_v4 = vrot.slane %v2403_v31, %v2379_v57 }
0x1280   :  { %v231_v5 = vrot.slane %v203_v8, %v2395_v63  ;;  %v207_v0 = vcombine.high %v203_v8, %v203_v8  ;;  %v431_v8 = vcombine.high %v409_v4, %v409_v4 }
0x1282   :  { %v239_v6 = vrot.slane %v207_v0, %v2395_v63  ;;  %v446_v10 = vrot.slane %v431_v8, %v2395_v63 }
0x12df   :  { %v1643_v44 = vpop.permute.xlu1 %1642 }
0x12e0   :  { %2045 = vmatmul.mubr.msk.f32.vlgmr.msra.gmra.mxu1 %vm24_vm0, %v1643_v44  ;;  %v902_v44 = vrot.slane %v885_v42, %v2395_v63 }
0x13a0   :  { %v1712_v54 = vpop.f32.mrf.mxu1 }
0x13a1   :  { %v2377_v55 = vadd.f32 %v1712_v54, %v1637_v53  ;;  %v211_v54 = vrot.slane %v182_v51, %v2395_v63 }
0x13a2   :  { %v2046_v56 = vpop.f32.mrf.mxu1 }
0x13a3   :  { %2112 = vtanh.f32 %v2377_v55  ;;  %v1918_v45 = vmul.f32 -1.442695, %v2377_v55  ;;  %v204_v55 = vcombine.high %v182_v51, %v182_v51 }
0x13a5   :  { %2114 = vpow2.f32 %v1918_v45  ;;  %v219_v59 = vrot.slane %v204_v55, %v2395_v63 }
0x13b0   :  { %v2113_v62 = vpop.eup %2112 }
0x13b1   :  { %1726 = vrot.lane.b32.xlu1 %v2113_v62, %s2124_s11  ;;  %v205_v62 = vcombine.high %v189_v9, %v189_v9 }
0x13b2   :  { %v2115_v46 = vpop.eup %2114 }
0x13b3   :  { %v1720_v47 = vadd.f32 1.0, %v2115_v46  ;;  %v235_v3 = vrot.slane %v205_v62, %v2395_v63 }
0x13b5   :  { %242 = vrot.lane.b32.xlu1 %v215_v1, %s2123_s2  ;;  %2116 = vrcp.f32 %v1720_v47 }
0x13b9   :  { %246 = vrot.lane.b32.xlu1 %v223_v7, %s2123_s2  ;;  %v438_v7 = vrot.slane %v409_v4, %v2395_v63 }
0x13bd   :  { %250 = vrot.lane.b32.xlu1 %v231_v5, %s2123_s2  ;;  %v416_v5 = vrot.slane %v2415_v11, %v2379_v57 }
0x13bf   :  { %v454_v0 = vrot.slane %v416_v5, %v2395_v63 }
0x13c1   :  { %254 = vrot.lane.b32.xlu1 %v239_v6, %s2123_s2  ;;  %v432_v6 = vcombine.high %v416_v5, %v416_v5 }
0x13c2   :  { %v2466_v48 = vpop.eup %2116 }
0x13c5   :  { %469 = vrot.lane.b32.xlu1 %v442_v14, %s2123_s2  ;;  %v462_v14 = vrot.slane %v432_v6, %v2395_v63  ;;  %v1724_v6 = vmul.f32 %v2466_v48, %v2363_v39 }
0x13c9   :  { %473 = vrot.lane.b32.xlu1 %v450_v18, %s2123_s2  ;;  %v657_v18 = vcombine.high %v635_v52, %v635_v52 }
0x13cb   :  { %v672_v21 = vrot.slane %v657_v18, %v2395_v63 }
0x13cd   :  { %477 = vrot.lane.b32.xlu1 %v458_v23, %s2123_s2  ;;  %v680_v23 = vrot.slane %v642_v22, %v2395_v63 }
0x13d1   :  { %481 = vrot.lane.b32.xlu1 %v466_v26, %s2123_s2 }
0x13d5   :  { %695 = vrot.lane.b32.xlu1 %v668_v28, %s2123_s2  ;;  %v688_v28 = vrot.slane %v658_v24, %v2395_v63 }
0x13d9   :  { %699 = vrot.lane.b32.xlu1 %v676_v32, %s2123_s2  ;;  %v890_v32 = vrot.slane %v861_v25, %v2395_v63 }
0x13dd   :  { %703 = vrot.lane.b32.xlu1 %v684_v35, %s2123_s2  ;;  %v2535_v35 = vrot.slane %v2332_v60, %v2379_v57 }
0x13df   :  { %v1087_v42 = vrot.slane %v2535_v35, %v2379_v57  ;;  %v1079_v22 = vcombine.high %v2535_v35, %v2535_v35 }
0x13e1   :  { %707 = vrot.lane.b32.xlu1 %v692_v37, %s2123_s2  ;;  %v884_v37 = vcombine.high %v868_v30, %v868_v30  ;;  %v1116_v45 = vrot.slane %v1087_v42, %v2395_v63  ;;  %v1109_v46 = vcombine.high %v1087_v42, %v1087_v42  ;;  %v1101_v27 = vrot.slane %v1079_v22, %v2379_v57 }
0x13e3   :  { %v1124_v47 = vrot.slane %v1109_v46, %v2395_v63  ;;  %v1120_v25 = vrot.slane %v1101_v27, %v2395_v63 }
0x13e5   :  { %921 = vrot.lane.b32.xlu1 %v894_v41, %s2123_s2  ;;  %v914_v41 = vrot.slane %v884_v37, %v2395_v63 }
0x13e9   :  { %925 = vrot.lane.b32.xlu1 %v902_v44, %s2123_s2  ;;  %v2546_v44 = vrot.slane %v1064_v40, %v2379_v57 }
0x13eb   :  { %v1094_v60 = vrot.slane %v2546_v44, %v2379_v57 }
0x13ed   :  { %v1110_v51 = vcombine.high %v1094_v60, %v1094_v60 }
0x1423   :  { %v1727_v49 = vpop.permute.xlu1 %1726 }
0x1424   :  { %v1729_v50 = vmul.f32 %v2466_v48, %v1727_v49  ;;  %v2556_v49 = vrot.slane %v2354_v20, %v2379_v57 }
0x1426   :  { %1731 = vrot.lane.b32.xlu0 %v1729_v50, %s2123_s2  ;;  %v1132_v50 = vrot.slane %v1094_v60, %v2395_v63  ;;  %v1313_v55 = vrot.slane %v2556_v49, %v2379_v57  ;;  %v1305_v30 = vcombine.high %v2556_v49, %v2556_v49 }
0x1427   :  { %v243_v53 = vpop.permute.xlu1 %242 }
0x1428   :  { %266 = vst.msk [vmem:[#allocation4 + $0x8] sm:$0x1] %vm264_vm2, %v243_v53  ;;  %v1290_v53 = vcombine.high %v2354_v20, %v2354_v20  ;;  %v1335_v9 = vcombine.high %v1313_v55, %v1313_v55 }
0x142a   :  { %240 = vrot.lane.b32.xlu0 %v211_v54, %s2123_s2  ;;  %v1140_v54 = vrot.slane %v1110_v51, %v2395_v63 }
0x142b   :  { %v247_v56 = vpop.permute.xlu1 %246 }
0x142c   :  { %268 = vst.msk [vmem:[#allocation4 + $0x18] sm:$0x1] %vm264_vm2, %v247_v56  ;;  %v2567_v56 = vrot.slane %v1290_v53, %v2379_v57 }
0x142e   :  { %244 = vrot.lane.b32.xlu0 %v219_v59, %s2123_s2  ;;  %v1342_v59 = vrot.slane %v1313_v55, %v2395_v63  ;;  %v1320_v20 = vrot.slane %v2567_v56, %v2379_v57  ;;  %v1306_v46 = vcombine.high %v2567_v56, %v2567_v56 }
0x142f   :  { %v251_v58 = vpop.permute.xlu1 %250 }
0x1430   :  { %270 = vst.msk [vmem:[#allocation4 + $0x28] sm:$0x1] %vm264_vm2, %v251_v58  ;;  %v1350_v58 = vrot.slane %v1335_v9, %v2395_v63  ;;  %v1358_v62 = vrot.slane %v1320_v20, %v2395_v63  ;;  %v1334_v49 = vrot.slane %v1306_v46, %v2379_v57 }
0x1432   :  { %248 = vrot.lane.b32.xlu0 %v227_v61, %s2123_s2  ;;  %v2577_v61 = vrot.slane %v2370_v43, %v2379_v57  ;;  %v1362_v53 = vrot.slane %v1334_v49, %v2395_v63 }
0x1433   :  { %v255_v1 = vpop.permute.xlu1 %254 }
0x1434   :  { %272 = vst.msk [vmem:[#allocation4 + $0x38] sm:$0x1] %vm264_vm2, %v255_v1  ;;  %v1336_v1 = vcombine.high %v1320_v20, %v1320_v20  ;;  %v1531_v51 = vcombine.high %v2577_v61, %v2577_v61 }
0x1436   :  { %252 = vrot.lane.b32.xlu0 %v235_v3, %s2123_s2  ;;  %v1516_v3 = vcombine.high %v2370_v43, %v2370_v43  ;;  %v1366_v4 = vrot.slane %v1336_v1, %v2395_v63 }
0x1437   :  { %v470_v12 = vpop.permute.xlu1 %469 }
0x1438   :  { %492 = vst.msk [vmem:[#allocation4 + $0x9] sm:$0x1] %vm264_vm2, %v470_v12  ;;  %v1539_v12 = vrot.slane %v2577_v61, %v2379_v57 }
0x143a   :  { %467 = vrot.lane.b32.xlu0 %v438_v7, %s2123_s2  ;;  %v2588_v7 = vrot.slane %v1516_v3, %v2379_v57  ;;  %v1568_v8 = vrot.slane %v1539_v12, %v2395_v63 }
0x143b   :  { %v474_v2 = vpop.permute.xlu1 %473 }
0x143c   :  { %494 = vst.msk [vmem:[#allocation4 + $0x19] sm:$0x1] %vm264_vm2, %v474_v2  ;;  %v1561_v2 = vcombine.high %v1539_v12, %v1539_v12  ;;  %v1546_v43 = vrot.slane %v2588_v7, %v2379_v57  ;;  %v1532_v61 = vcombine.high %v2588_v7, %v2588_v7 }
0x143e   :  { %471 = vrot.lane.b32.xlu0 %v446_v10, %s2123_s2  ;;  %v1576_v10 = vrot.slane %v1561_v2, %v2395_v63  ;;  %v1584_v5 = vrot.slane %v1546_v43, %v2395_v63  ;;  %v1560_v3 = vrot.slane %v1532_v61, %v2379_v57 }
0x143f   :  { %v478_v31 = vpop.permute.xlu1 %477 }
0x1440   :  { %496 = vst.msk [vmem:[#allocation4 + $0x29] sm:$0x1] %vm264_vm2, %v478_v31  ;;  %v1562_v31 = vcombine.high %v1546_v43, %v1546_v43  ;;  %v1588_v12 = vrot.slane %v1560_v3, %v2395_v63 }
0x1442   :  { %475 = vrot.lane.b32.xlu0 %v454_v0, %s2123_s2  ;;  %v1592_v0 = vrot.slane %v1562_v31, %v2395_v63 }
0x1443   :  { %v482_v13 = vpop.permute.xlu1 %481 }
0x1444   :  { %498 = vst.msk [vmem:[#allocation4 + $0x39] sm:$0x1] %vm264_vm2, %v482_v13 }
0x1446   :  { %479 = vrot.lane.b32.xlu0 %v462_v14, %s2123_s2 }
0x1447   :  { %v696_v11 = vpop.permute.xlu1 %695 }
0x1448   :  { %718 = vst.msk [vmem:[#allocation4 + $0xa] sm:$0x1] %vm264_vm2, %v696_v11 }
0x144a   :  { %693 = vrot.lane.b32.xlu0 %v664_v15, %s2123_s2  ;;  %v854_v15 = vcombine.high %v2523_v29, %v2523_v29  ;;  %v1080_v29 = vcombine.high %v2546_v44, %v2546_v44 }
0x144b   :  { %v700_v19 = vpop.permute.xlu1 %699 }
0x144c   :  { %720 = vst.msk [vmem:[#allocation4 + $0x1a] sm:$0x1] %vm264_vm2, %v700_v19  ;;  %v882_v19 = vrot.slane %v854_v15, %v2379_v57 }
0x144e   :  { %697 = vrot.lane.b32.xlu0 %v672_v21, %s2123_s2 }
0x144f   :  { %v704_v17 = vpop.permute.xlu1 %703 }
0x1450   :  { %722 = vst.msk [vmem:[#allocation4 + $0x2a] sm:$0x1] %vm264_vm2, %v704_v17  ;;  %v910_v17 = vrot.slane %v882_v19, %v2395_v63 }
0x1452   :  { %701 = vrot.lane.b32.xlu0 %v680_v23, %s2123_s2  ;;  %v886_v23 = vcombine.high %v882_v19, %v882_v19 }
0x1453   :  { %v708_v26 = vpop.permute.xlu1 %707 }
0x1454   :  { %724 = vst.msk [vmem:[#allocation4 + $0x3a] sm:$0x1] %vm264_vm2, %v708_v26  ;;  %v918_v26 = vrot.slane %v886_v23, %v2395_v63 }
0x1456   :  { %705 = vrot.lane.b32.xlu0 %v688_v28, %s2123_s2 }
0x1457   :  { %v922_v16 = vpop.permute.xlu1 %921 }
0x1458   :  { %944 = vst.msk [vmem:[#allocation4 + $0xb] sm:$0x1] %vm264_vm2, %v922_v16  ;;  %v1111_v16 = vcombine.high %v1101_v27, %v1101_v27 }
0x145a   :  { %919 = vrot.lane.b32.xlu0 %v890_v32, %s2123_s2  ;;  %v1128_v33 = vrot.slane %v1111_v16, %v2395_v63 }
0x145b   :  { %v926_v38 = vpop.permute.xlu1 %925 }
0x145c   :  { %946 = vst.msk [vmem:[#allocation4 + $0x1b] sm:$0x1] %vm264_vm2, %v926_v38  ;;  %v1108_v38 = vrot.slane %v1080_v29, %v2379_v57 }
0x145e   :  { %923 = vrot.lane.b32.xlu0 %v898_v34, %s2123_s2  ;;  %v1136_v35 = vrot.slane %v1108_v38, %v2395_v63 }
0x1462   :  { %927 = vrot.lane.b32.xlu0 %v906_v36, %s2123_s2  ;;  %v1112_v36 = vcombine.high %v1108_v38, %v1108_v38 }
0x1464   :  { %v1144_v40 = vrot.slane %v1112_v36, %v2395_v63 }
0x1466   :  { %931 = vrot.lane.b32.xlu0 %v914_v41, %s2123_s2  ;;  %v1327_v41 = vrot.slane %v1305_v30, %v2379_v57 }
0x1468   :  { %v1346_v44 = vrot.slane %v1327_v41, %v2395_v63 }
0x146a   :  { %1145 = vrot.lane.b32.xlu0 %v1116_v45, %s2123_s2  ;;  %v1337_v45 = vcombine.high %v1327_v41, %v1327_v41 }
0x146c   :  { %v1354_v60 = vrot.slane %v1337_v45, %v2395_v63 }
0x146e   :  { %1149 = vrot.lane.b32.xlu0 %v1124_v47, %s2123_s2 }
0x1472   :  { %1153 = vrot.lane.b32.xlu0 %v1132_v50, %s2123_s2 }
0x1476   :  { %1157 = vrot.lane.b32.xlu0 %v1140_v54, %s2123_s2  ;;  %v1338_v54 = vcombine.high %v1334_v49, %v1334_v49 }
0x1478   :  { %v1370_v56 = vrot.slane %v1338_v54, %v2395_v63 }
0x147a   :  { %1371 = vrot.lane.b32.xlu0 %v1342_v59, %s2123_s2  ;;  %v1553_v59 = vrot.slane %v1531_v51, %v2379_v57 }
0x147c   :  { %v1563_v20 = vcombine.high %v1553_v59, %v1553_v59 }
0x147e   :  { %1375 = vrot.lane.b32.xlu0 %v1350_v58, %s2123_s2  ;;  %v1572_v58 = vrot.slane %v1553_v59, %v2395_v63  ;;  %v1580_v1 = vrot.slane %v1563_v20, %v2395_v63 }
0x1482   :  { %1379 = vrot.lane.b32.xlu0 %v1358_v62, %s2123_s2 }
0x1486   :  { %1383 = vrot.lane.b32.xlu0 %v1366_v4, %s2123_s2 }
0x148a   :  { %1597 = vrot.lane.b32.xlu0 %v1568_v8, %s2123_s2  ;;  %v1564_v8 = vcombine.high %v1560_v3, %v1560_v3 }
0x148c   :  { %v1596_v7 = vrot.slane %v1564_v8, %v2395_v63 }
0x148e   :  { %1601 = vrot.lane.b32.xlu0 %v1576_v10, %s2123_s2 }
0x1492   :  { %1605 = vrot.lane.b32.xlu0 %v1584_v5, %s2123_s2 }
0x1496   :  { %1609 = vrot.lane.b32.xlu0 %v1592_v0, %s2123_s2 }
0x1498   :  { %v1732_v13 = vpop.permute.xlu0 %1731 }
0x1499   :  { %v2602_v14 = vadd.f32 %v1732_v13, %v1724_v6 }
0x149b   :  { %2118 = vtanh.f32 %v2602_v14 }
0x149c   :  { %v241_v52 = vpop.permute.xlu0 %240 }
0x149d   :  { %265 = vst.msk [vmem:[#allocation4] sm:$0x1] %vm264_vm2, %v241_v52 }
0x14a0   :  { %v245_v11 = vpop.permute.xlu0 %244 }
0x14a1   :  { %267 = vst.msk [vmem:[#allocation4 + $0x10] sm:$0x1] %vm264_vm2, %v245_v11 }
0x14a4   :  { %v249_v18 = vpop.permute.xlu0 %248 }
0x14a5   :  { %269 = vst.msk [vmem:[#allocation4 + $0x20] sm:$0x1] %vm264_vm2, %v249_v18 }
0x14a8   :  { %v2119_v39 = vpop.eup %2118  ;;  %v253_v21 = vpop.permute.xlu0 %252 }
0x14a9   :  { %271 = vst.msk [vmem:[#allocation4 + $0x30] sm:$0x1] %vm264_vm2, %v253_v21  ;;  %1737 = vrot.lane.b32.xlu1 %v2119_v39, %s2124_s11 }
0x14ac   :  { %v468_v24 = vpop.permute.xlu0 %467 }
0x14ad   :  { %491 = vst.msk [vmem:[#allocation4 + $0x1] sm:$0x1] %vm264_vm2, %v468_v24  ;;  %929 = vrot.lane.b32.xlu1 %v910_v17, %s2123_s2 }
0x14b0   :  { %v472_v28 = vpop.permute.xlu0 %471 }
0x14b1   :  { %493 = vst.msk [vmem:[#allocation4 + $0x11] sm:$0x1] %vm264_vm2, %v472_v28  ;;  %933 = vrot.lane.b32.xlu1 %v918_v26, %s2123_s2 }
0x14b4   :  { %v476_v32 = vpop.permute.xlu0 %475 }
0x14b5   :  { %495 = vst.msk [vmem:[#allocation4 + $0x21] sm:$0x1] %vm264_vm2, %v476_v32  ;;  %1147 = vrot.lane.b32.xlu1 %v1120_v25, %s2123_s2 }
0x14b8   :  { %v480_v34 = vpop.permute.xlu0 %479 }
0x14b9   :  { %497 = vst.msk [vmem:[#allocation4 + $0x31] sm:$0x1] %vm264_vm2, %v480_v34  ;;  %1151 = vrot.lane.b32.xlu1 %v1128_v33, %s2123_s2 }
0x14bc   :  { %v694_v37 = vpop.permute.xlu0 %693 }
0x14bd   :  { %717 = vst.msk [vmem:[#allocation4 + $0x2] sm:$0x1] %vm264_vm2, %v694_v37  ;;  %1155 = vrot.lane.b32.xlu1 %v1136_v35, %s2123_s2 }
0x14c0   :  { %v698_v42 = vpop.permute.xlu0 %697 }
0x14c1   :  { %719 = vst.msk [vmem:[#allocation4 + $0x12] sm:$0x1] %vm264_vm2, %v698_v42  ;;  %1159 = vrot.lane.b32.xlu1 %v1144_v40, %s2123_s2 }
0x14c4   :  { %v702_v47 = vpop.permute.xlu0 %701 }
0x14c5   :  { %721 = vst.msk [vmem:[#allocation4 + $0x22] sm:$0x1] %vm264_vm2, %v702_v47  ;;  %1373 = vrot.lane.b32.xlu1 %v1346_v44, %s2123_s2 }
0x14c8   :  { %v706_v50 = vpop.permute.xlu0 %705 }
0x14c9   :  { %723 = vst.msk [vmem:[#allocation4 + $0x32] sm:$0x1] %vm264_vm2, %v706_v50  ;;  %1377 = vrot.lane.b32.xlu1 %v1354_v60, %s2123_s2 }
0x14cc   :  { %v920_v55 = vpop.permute.xlu0 %919 }
0x14cd   :  { %943 = vst.msk [vmem:[#allocation4 + $0x3] sm:$0x1] %vm264_vm2, %v920_v55  ;;  %1381 = vrot.lane.b32.xlu1 %v1362_v53, %s2123_s2 }
0x14d0   :  { %v924_v9 = vpop.permute.xlu0 %923 }
0x14d1   :  { %945 = vst.msk [vmem:[#allocation4 + $0x13] sm:$0x1] %vm264_vm2, %v924_v9  ;;  %1385 = vrot.lane.b32.xlu1 %v1370_v56, %s2123_s2 }
0x14d4   :  { %v928_v62 = vpop.permute.xlu0 %927 }
0x14d5   :  { %947 = vst.msk [vmem:[#allocation4 + $0x23] sm:$0x1] %vm264_vm2, %v928_v62  ;;  %1599 = vrot.lane.b32.xlu1 %v1572_v58, %s2123_s2 }
0x14d8   :  { %v932_v4 = vpop.permute.xlu0 %931 }
0x14d9   :  { %949 = vst.msk [vmem:[#allocation4 + $0x33] sm:$0x1] %vm264_vm2, %v932_v4  ;;  %1603 = vrot.lane.b32.xlu1 %v1580_v1, %s2123_s2 }
0x14dc   :  { %v1146_v2 = vpop.permute.xlu0 %1145 }
0x14dd   :  { %1169 = vst.msk [vmem:[#allocation4 + $0x4] sm:$0x1] %vm264_vm2, %v1146_v2  ;;  %1607 = vrot.lane.b32.xlu1 %v1588_v12, %s2123_s2 }
0x14e0   :  { %v1150_v10 = vpop.permute.xlu0 %1149 }
0x14e1   :  { %1171 = vst.msk [vmem:[#allocation4 + $0x14] sm:$0x1] %vm264_vm2, %v1150_v10  ;;  %1611 = vrot.lane.b32.xlu1 %v1596_v7, %s2123_s2 }
0x14e4   :  { %v1154_v43 = vpop.permute.xlu0 %1153 }
0x14e5   :  { %1173 = vst.msk [vmem:[#allocation4 + $0x24] sm:$0x1] %vm264_vm2, %v1154_v43 }
0x14e8   :  { %v1158_v5 = vpop.permute.xlu0 %1157 }
0x14e9   :  { %1175 = vst.msk [vmem:[#allocation4 + $0x34] sm:$0x1] %vm264_vm2, %v1158_v5 }
0x14ec   :  { %v1372_v31 = vpop.permute.xlu0 %1371 }
0x14ed   :  { %1395 = vst.msk [vmem:[#allocation4 + $0x5] sm:$0x1] %vm264_vm2, %v1372_v31 }
0x14f0   :  { %v1376_v0 = vpop.permute.xlu0 %1375 }
0x14f1   :  { %1397 = vst.msk [vmem:[#allocation4 + $0x15] sm:$0x1] %vm264_vm2, %v1376_v0 }
0x14f4   :  { %v1380_v6 = vpop.permute.xlu0 %1379 }
0x14f5   :  { %1399 = vst.msk [vmem:[#allocation4 + $0x25] sm:$0x1] %vm264_vm2, %v1380_v6 }
0x14f8   :  { %v1384_v13 = vpop.permute.xlu0 %1383 }
0x14f9   :  { %1401 = vst.msk [vmem:[#allocation4 + $0x35] sm:$0x1] %vm264_vm2, %v1384_v13 }
0x14fc   :  { %v1598_v52 = vpop.permute.xlu0 %1597 }
0x14fd   :  { %1621 = vst.msk [vmem:[#allocation4 + $0x6] sm:$0x1] %vm264_vm2, %v1598_v52 }
0x1500   :  { %v1602_v11 = vpop.permute.xlu0 %1601 }
0x1501   :  { %1623 = vst.msk [vmem:[#allocation4 + $0x16] sm:$0x1] %vm264_vm2, %v1602_v11 }
0x1504   :  { %v1606_v15 = vpop.permute.xlu0 %1605 }
0x1505   :  { %1625 = vst.msk [vmem:[#allocation4 + $0x26] sm:$0x1] %vm264_vm2, %v1606_v15 }
0x1508   :  { %v1610_v18 = vpop.permute.xlu0 %1609 }
0x1509   :  { %1627 = vst.msk [vmem:[#allocation4 + $0x36] sm:$0x1] %vm264_vm2, %v1610_v18 }
0x151b   :  { %v1738_v19 = vpop.permute.xlu1 %1737 }
0x151c   :  { %v1740_v39 = vmul.f32 %v2466_v48, %v1738_v19 }
0x151e   :  { %v1742_v21 = vcombine.high %v1740_v39, %v1740_v39  ;;  %v1749_v22 = vrot.slane %v1740_v39, %v2379_v57 }
0x151f   :  { %v930_v17 = vpop.permute.xlu1 %929 }
0x1520   :  { %v1757_v23 = vcombine.high %v1749_v22, %v1749_v22  ;;  %948 = vst.msk [vmem:[#allocation4 + $0x2b] sm:$0x1] %vm264_vm2, %v930_v17  ;;  %v1765_v24 = vrot.slane %v1749_v22, %v2379_v57  ;;  %v1756_v26 = vrot.slane %v1742_v21, %v2379_v57 }
0x1522   :  { %v1794_v27 = vrot.slane %v1765_v24, %v2395_v63  ;;  %v1787_v28 = vcombine.high %v1765_v24, %v1765_v24  ;;  %v1779_v16 = vrot.slane %v1757_v23, %v2379_v57  ;;  %v1758_v48 = vcombine.high %v1756_v26, %v1756_v26 }
0x1523   :  { %v934_v25 = vpop.permute.xlu1 %933  ;;  %v1772_v33 = vrot.slane %v1756_v26, %v2379_v57 }
0x1524   :  { %950 = vst.msk [vmem:[#allocation4 + $0x3b] sm:$0x1] %vm264_vm2, %v934_v25  ;;  %1823 = vrot.lane.b32.xlu0 %v1794_v27, %s2123_s2  ;;  %v1798_v29 = vrot.slane %v1779_v16, %v2395_v63  ;;  %v1789_v32 = vcombine.high %v1779_v16, %v1779_v16  ;;  %v1802_v38 = vrot.slane %v1787_v28, %v2395_v63 }
0x1525   :  { %v1786_v35 = vrot.slane %v1758_v48, %v2379_v57  ;;  %v1810_v36 = vrot.slane %v1772_v33, %v2395_v63  ;;  %v1788_v37 = vcombine.high %v1772_v33, %v1772_v33 }
0x1526   :  { %1825 = vrot.lane.b32.xlu1 %v1798_v29, %s2123_s2  ;;  %v1806_v30 = vrot.slane %v1789_v32, %v2395_v63 }
0x1527   :  { %v1148_v34 = vpop.permute.xlu1 %1147  ;;  %v1814_v41 = vrot.slane %v1786_v35, %v2395_v63  ;;  %v1790_v42 = vcombine.high %v1786_v35, %v1786_v35  ;;  %v1818_v44 = vrot.slane %v1788_v37, %v2395_v63 }
0x1528   :  { %1170 = vst.msk [vmem:[#allocation4 + $0xc] sm:$0x1] %vm264_vm2, %v1148_v34  ;;  %1827 = vrot.lane.b32.xlu0 %v1802_v38, %s2123_s2 }
0x1529   :  { %v1822_v57 = vrot.slane %v1790_v42, %v2395_v63 }
0x152a   :  { %1829 = vrot.lane.b32.xlu1 %v1806_v30, %s2123_s2 }
0x152b   :  { %v1152_v40 = vpop.permute.xlu1 %1151 }
0x152c   :  { %1172 = vst.msk [vmem:[#allocation4 + $0x1c] sm:$0x1] %vm264_vm2, %v1152_v40  ;;  %1831 = vrot.lane.b32.xlu0 %v1810_v36, %s2123_s2 }
0x152e   :  { %1833 = vrot.lane.b32.xlu1 %v1814_v41, %s2123_s2 }
0x152f   :  { %v1156_v45 = vpop.permute.xlu1 %1155 }
0x1530   :  { %1174 = vst.msk [vmem:[#allocation4 + $0x2c] sm:$0x1] %vm264_vm2, %v1156_v45  ;;  %1835 = vrot.lane.b32.xlu0 %v1818_v44, %s2123_s2 }
0x1532   :  { %1837 = vrot.lane.b32.xlu1 %v1822_v57, %s2123_s2 }
0x1533   :  { %v1160_v46 = vpop.permute.xlu1 %1159 }
0x1534   :  { %1176 = vst.msk [vmem:[#allocation4 + $0x3c] sm:$0x1] %vm264_vm2, %v1160_v46  ;;  %1871 = vrot.lane.b32.xlu0 %v1740_v39, %s2123_s2 }
0x1536   :  { %1876 = vrot.lane.b32.xlu1 %v2602_v14, %s2126_s0 }
0x1537   :  { %v1374_v47 = vpop.permute.xlu1 %1373 }
0x1538   :  { %1396 = vst.msk [vmem:[#allocation4 + $0xd] sm:$0x1] %vm264_vm2, %v1374_v47 }
0x153b   :  { %v1378_v60 = vpop.permute.xlu1 %1377 }
0x153c   :  { %1398 = vst.msk [vmem:[#allocation4 + $0x1d] sm:$0x1] %vm264_vm2, %v1378_v60 }
0x153f   :  { %v1382_v49 = vpop.permute.xlu1 %1381 }
0x1540   :  { %1400 = vst.msk [vmem:[#allocation4 + $0x2d] sm:$0x1] %vm264_vm2, %v1382_v49 }
0x1543   :  { %v1386_v63 = vpop.permute.xlu1 %1385 }
0x1544   :  { %1402 = vst.msk [vmem:[#allocation4 + $0x3d] sm:$0x1] %vm264_vm2, %v1386_v63 }
0x1547   :  { %v1600_v50 = vpop.permute.xlu1 %1599 }
0x1548   :  { %1622 = vst.msk [vmem:[#allocation4 + $0xe] sm:$0x1] %vm264_vm2, %v1600_v50 }
0x154b   :  { %v1604_v51 = vpop.permute.xlu1 %1603 }
0x154c   :  { %1624 = vst.msk [vmem:[#allocation4 + $0x1e] sm:$0x1] %vm264_vm2, %v1604_v51 }
0x154f   :  { %v1608_v53 = vpop.permute.xlu1 %1607 }
0x1550   :  { %1626 = vst.msk [vmem:[#allocation4 + $0x2e] sm:$0x1] %vm264_vm2, %v1608_v53 }
0x1553   :  { %v1612_v14 = vpop.permute.xlu1 %1611 }
0x1554   :  { %1628 = vst.msk [vmem:[#allocation4 + $0x3e] sm:$0x1] %vm264_vm2, %v1612_v14 }
0x1596   :  { %v1824_v54 = vpop.permute.xlu0 %1823 }
0x1597   :  { %1847 = vst.msk [vmem:[#allocation4 + $0x7] sm:$0x1] %vm264_vm2, %v1824_v54 }
0x1598   :  { %v1826_v55 = vpop.permute.xlu1 %1825 }
0x1599   :  { %1848 = vst.msk [vmem:[#allocation4 + $0xf] sm:$0x1] %vm264_vm2, %v1826_v55 }
0x159a   :  { %v1828_v56 = vpop.permute.xlu0 %1827 }
0x159b   :  { %1849 = vst.msk [vmem:[#allocation4 + $0x17] sm:$0x1] %vm264_vm2, %v1828_v56 }
0x159c   :  { %v1830_v59 = vpop.permute.xlu1 %1829 }
0x159d   :  { %1850 = vst.msk [vmem:[#allocation4 + $0x1f] sm:$0x1] %vm264_vm2, %v1830_v59 }
0x159e   :  { %v1855_v9 = vld [vmem:[#allocation4] sm:$0xff]  ;;  %v1832_v58 = vpop.permute.xlu0 %1831 }
0x159f   :  { %1863 = vst.msk [vmem:[%s2776_s4] sm:$0xff] %vm24_vm0, %v1855_v9 }
0x15a0   :  { %1851 = vst.msk [vmem:[#allocation4 + $0x27] sm:$0x1] %vm264_vm2, %v1832_v58  ;;  %v1856_v20 = vld [vmem:[#allocation4 + $0x8] sm:$0xff]  ;;  %v1834_v61 = vpop.permute.xlu1 %1833 }
0x15a1   :  { %1864 = vst.msk [vmem:[%s2776_s4 + $0x8] sm:$0xff] %vm24_vm0, %v1856_v20 }
0x15a2   :  { %v1857_v62 = vld [vmem:[#allocation4 + $0x10] sm:$0xff]  ;;  %1852 = vst.msk [vmem:[#allocation4 + $0x2f] sm:$0x1] %vm264_vm2, %v1834_v61  ;;  %v1836_v1 = vpop.permute.xlu0 %1835 }
0x15a3   :  { %1865 = vst.msk [vmem:[%s2776_s4 + $0x10] sm:$0xff] %vm24_vm0, %v1857_v62 }
0x15a4   :  { %1853 = vst.msk [vmem:[#allocation4 + $0x37] sm:$0x1] %vm264_vm2, %v1836_v1  ;;  %v1858_v3 = vld [vmem:[#allocation4 + $0x18] sm:$0xff]  ;;  %v1838_v4 = vpop.permute.xlu1 %1837 }
0x15a5   :  { %1866 = vst.msk [vmem:[%s2776_s4 + $0x18] sm:$0xff] %vm24_vm0, %v1858_v3 }
0x15a6   :  { %1854 = vst.msk [vmem:[#allocation4 + $0x3f] sm:$0x1] %vm264_vm2, %v1838_v4  ;;  %v1872_v8 = vpop.permute.xlu0 %1871 }
0x15a7   :  { %v1859_v12 = vld [vmem:[#allocation4 + $0x20] sm:$0xff]  ;;  %1874 = vst.msk [vmem:[#allocation2] sm:$0xff] %vm24_vm0, %v1872_v8  ;;  %1880 = vst.msk [vmem:[%s2777_s5] sm:$0xff] %vm24_vm0, %v1872_v8 }
0x15a8   :  { %1867 = vst.msk [vmem:[%s2776_s4 + $0x20] sm:$0xff] %vm24_vm0, %v1859_v12  ;;  %v1877_v7 = vpop.permute.xlu1 %1876 }
0x15a9   :  { %v1860_v2 = vld [vmem:[#allocation4 + $0x28] sm:$0xff]  ;;  %1879 = vst.msk [vmem:[#allocation3] sm:$0xff] %vm24_vm0, %v1877_v7  ;;  %1881 = vst.msk [vmem:[%s2778_s6] sm:$0xff] %vm24_vm0, %v1877_v7 }
0x15aa   :  { %1868 = vst.msk [vmem:[%s2776_s4 + $0x28] sm:$0xff] %vm24_vm0, %v1860_v2 }
0x15ab   :  { %v1861_v10 = vld [vmem:[#allocation4 + $0x30] sm:$0xff] }
0x15ac   :  { %1869 = vst.msk [vmem:[%s2776_s4 + $0x30] sm:$0xff] %vm24_vm0, %v1861_v10 }
0x15ad   :  { %v1862_v43 = vld [vmem:[#allocation4 + $0x38] sm:$0xff] }
0x15ae   :  { %1870 = vst.msk [vmem:[%s2776_s4 + $0x38] sm:$0xff] %vm24_vm0, %v1862_v43 }

</bundles_post_ra>
